<compile_context>
chip_gen: v7x
topology: tpu7x:2x2x1
jax: 0.10.0
libtpu: 0.0.40
codegen_flags: <defaults>
</compile_context>

<pallas_src>
import math

import jax
import jax.numpy as jnp
from jax.experimental import pallas as pl
from jax.experimental.pallas import tpu as pltpu


def _erf(z):
    """erf via Abramowitz & Stegun 7.1.26 (poly err <= 1.5e-7; the approx
    reciprocal adds ~1e-3 worst-case to the downstream GELU)."""
    a1, a2, a3, a4, a5 = (0.254829592, -0.284496736, 1.421413741,
                          -1.453152027, 1.061405429)
    p = 0.3275911
    za = jnp.abs(z)
    # approx=True -> EUP slot instead of a VPU divide (frees VALU, esp. v5e).
    t = pl.reciprocal(1.0 + p * za, approx=True)
    poly = ((((a5 * t + a4) * t + a3) * t + a2) * t + a1) * t
    e = 1.0 - poly * jnp.exp(-za * za)
    return jnp.where(z >= 0, e, -e)


def _gelu_erf(x):
    # Matches torch.nn.functional.gelu default (erf-based).
    return 0.5 * x * (1.0 + _erf(x * (1.0 / math.sqrt(2.0))))


def geglu_kernel(x_ref, wkv_ref, bkv_ref, ww_ref, bw_ref, o_ref):
    h2 = wkv_ref.shape[1]          # 2 * hidden
    hid = h2 // 2
    x = x_ref[...]                                                 # (tm, C) f32
    # Fused k|v projection: bf16 operands on the MXU, f32 accumulation.
    kv = jnp.dot(x.astype(jnp.bfloat16), wkv_ref[...],
                 preferred_element_type=jnp.float32) + bkv_ref[...]  # (tm, 2H) f32
    # Consume kv immediately (keeps peak f32 liveness at one (tm, 2H) slab);
    # hid is a multiple of 128 so the static lane slices are layout-friendly.
    h = (_gelu_erf(kv[:, :hid]) * kv[:, hid:]).astype(jnp.bfloat16)  # (tm, H) bf16
    y = jnp.dot(h, ww_ref[...], preferred_element_type=jnp.float32) + bw_ref[...]
    o_ref[...] = y.astype(o_ref.dtype)


def _round_up(n, m):
    return (n + m - 1) // m * m


def geglu(x, wk, bk, wv, bv, ww, bw, *, time_shift=False, block_m=512,
          min_grid_steps=1):
    """GeGLU forward. x: (B, T, C); weights stored as (in, out), biases (1, out).

    block_m: row-tile size; sweep 512-1024 for large B*T (cap by VMEM on v7x).
    min_grid_steps: set >=2 on v7x (2 TensorCores) when the kernel is MXU-bound
      so the "parallel" grid axis has work to shard; leave 1 on v5e/v6e.
    """
    B, T, C = x.shape
    H = wk.shape[1]                                     # 3 * n_ffn
    h2 = 2 * H

    if time_shift:
        # torch: cat([ZeroPad2d((0,0,1,-1))(x[:,:,:C//2]), x[:,:,C//2:]], -1)
        # TODO(synk): fuse this 1-row shift of the first C//2 lanes into the
        # kernel (sublane roll + one halo row) to avoid two extra HBM passes.
        half = C // 2
        shifted = jnp.pad(x[:, :, :half], ((0, 0), (1, 0), (0, 0)))[:, :T, :]
        x = jnp.concatenate([shifted, x[:, :, half:]], axis=-1)

    # Fused / bf16 weights. (Production callers should pre-fuse & store these
    # once at init; done per call here only to accept torch-layout weights.)
    wkv = jnp.concatenate([wk, wv], axis=1).astype(jnp.bfloat16)    # (C, 2H)
    bkv = jnp.concatenate([bk, bv], axis=1).astype(jnp.float32)     # (1, 2H)
    wwb = ww.astype(jnp.bfloat16)                                   # (H, C)
    bwf = bw.astype(jnp.float32)                                    # (1, C)

    # Fold batch into the matmul M dimension: one lane-dense (M, C) slab.
    M = B * T
    x2 = x.reshape(M, C)

    tm = min(block_m, _round_up(M, 8))                  # row tile (sublane mult)
    if min_grid_steps > 1:                              # v7x megacore knob
        tm = min(tm, max(8, _round_up(pl.cdiv(M, min_grid_steps), 8)))
    m_pad = _round_up(M, tm)
    if m_pad != M:
        # TODO(synk): handle the ragged last row-tile with a masked store
        # instead of this wrapper-side pad (extra HBM pass). Not hit when the
        # row tile divides B*T (as in the demo and typical production shapes).
        x2 = jnp.pad(x2, ((0, m_pad - M), (0, 0)))

    # VMEM budget: single-buffered weights/biases + double-buffered x/out tiles
    # + in-kernel intermediates, with headroom; capped at v7x physical (64 MiB),
    # floored at the 32 MiB scoped default.
    weight_bytes = (wkv.size + wwb.size) * 2 + (bkv.size + bwf.size) * 4
    stream_bytes = 2 * 2 * tm * C * 4
    interm_bytes = tm * (C * 2 + h2 * 4 + H * 2 + C * 4)
    vmem_limit = int(1.5 * (weight_bytes + stream_bytes + interm_bytes))
    vmem_limit = max(32 << 20, min(vmem_limit, 64 << 20))

    def run(weight_kw):
        in_specs = [
            pl.BlockSpec((tm, C), lambda i: (i, 0)),                 # x rows (streamed)
            pl.BlockSpec((C, h2), lambda i: (0, 0), **weight_kw),    # [Wk|Wv] bf16
            pl.BlockSpec((1, h2), lambda i: (0, 0), **weight_kw),    # [bk|bv] f32
            pl.BlockSpec((H, C), lambda i: (0, 0), **weight_kw),     # W_out  bf16
            pl.BlockSpec((1, C), lambda i: (0, 0), **weight_kw),     # b_out  f32
        ]
        return pl.pallas_call(
            geglu_kernel,
            out_shape=jax.ShapeDtypeStruct((m_pad, C), x.dtype),
            grid_spec=pltpu.PrefetchScalarGridSpec(
                num_scalar_prefetch=0,
                grid=(m_pad // tm,),
                in_specs=in_specs,
                out_specs=pl.BlockSpec((tm, C), lambda i: (i, 0)),
            ),
            compiler_params=pltpu.CompilerParams(
                dimension_semantics=("parallel",),       # megacore on v7x
                vmem_limit_bytes=vmem_limit),
        )(x2, wkv, bkv, wwb, bwf)

    try:
        # Grid-invariant operands -> single-buffer them (no point double-
        # buffering a constant-index block; halves resident weight VMEM).
        out = run({"pipeline_mode": pl.Buffered(1)})
    except Exception:
        # Fallback for jax builds without BlockSpec.pipeline_mode support;
        # identical semantics, default (double) buffering.
        out = run({})

    return out[:M].reshape(B, T, C)


def geglu_ref(x, wk, bk, wv, bv, ww, bw, *, time_shift=False):
    """Pure-JAX f32 reference mirroring the PyTorch forward (exact erf gelu)."""
    B, T, C = x.shape
    if time_shift:
        half = C // 2
        shifted = jnp.pad(x[:, :, :half], ((0, 0), (1, 0), (0, 0)))[:, :T, :]
        x = jnp.concatenate([shifted, x[:, :, half:]], axis=-1)
    hp = jax.lax.Precision.HIGHEST
    k = jnp.dot(x, wk, precision=hp) + bk[0]
    v = jnp.dot(x, wv, precision=hp) + bv[0]
    g = 0.5 * k * (1.0 + jax.scipy.special.erf(k / math.sqrt(2.0)))
    return jnp.dot(g * v, ww, precision=hp) + bw[0]


if __name__ == "__main__":
    # Small, lane-friendly module config: C = n_embd = 128, hidden = 3*n_ffn = 384.
    n_embd, n_ffn = 128, 128
    hidden = 3 * n_ffn
    B, T = 2, 8

    key = jax.random.PRNGKey(0)
    kx, k1, k2, k3, k4, k5, k6 = jax.random.split(key, 7)

    wk = jax.random.normal(k1, (n_embd, hidden), jnp.float32) / math.sqrt(n_embd)
    bk = jax.random.normal(k2, (1, hidden), jnp.float32) * 0.01
    wv = jax.random.normal(k3, (n_embd, hidden), jnp.float32) / math.sqrt(n_embd)
    bv = jax.random.normal(k4, (1, hidden), jnp.float32) * 0.01
    ww = jax.random.normal(k5, (hidden, n_embd), jnp.float32) / math.sqrt(hidden)
    bw = jax.random.normal(k6, (1, n_embd), jnp.float32) * 0.01
    x = jax.random.normal(kx, (B, T, n_embd), jnp.float32)

    # Exercise both the default path and the optional time_shift path.
    for ts in (False, True):
        out = jax.block_until_ready(geglu(x, wk, bk, wv, bv, ww, bw, time_shift=ts))
        ref = geglu_ref(x, wk, bk, wv, bv, ww, bw, time_shift=ts)
        assert out.shape == (B, T, n_embd)
        err = jnp.abs(out - ref)
        # bf16 MXU operands + approx erf/reciprocal vs an f32 reference:
        # expect a few 1e-3 absolute on O(1) outputs.
        assert float(jnp.max(err)) < 4e-2, f"max err {float(jnp.max(err))}"
        assert float(jnp.mean(err)) < 5e-3, f"mean err {float(jnp.mean(err))}"

    print("KERNEL_OK")
</pallas_src>

<mosaic_0001>
module attributes {stable_mosaic.version = 11 : i64} {
  func.func @geglu_kernel(%arg0: i32, %arg1: memref<16x128xf32, #tpu.memory_space<vmem>>, %arg2: memref<128x768xbf16, #tpu.memory_space<vmem>>, %arg3: memref<1x768xf32, #tpu.memory_space<vmem>>, %arg4: memref<384x128xbf16, #tpu.memory_space<vmem>>, %arg5: memref<1x128xf32, #tpu.memory_space<vmem>>, %arg6: memref<16x128xf32, #tpu.memory_space<vmem>>) attributes {dimension_semantics = [#tpu.dimension_semantics<parallel>], iteration_bounds = array<i64: 1>, scalar_prefetch = 0 : i64, scratch_operands = 0 : i64, tpu.core_type = #tpu.core_type<tc>, window_params = [{transform_indices = @transform_0, window_bounds = array<i64: 16, 128>}, {pipeline_mode = #tpu.pipeline_mode<synchronous>, transform_indices = @transform_1, window_bounds = array<i64: 128, 768>}, {pipeline_mode = #tpu.pipeline_mode<synchronous>, transform_indices = @transform_2, window_bounds = array<i64: 1, 768>}, {pipeline_mode = #tpu.pipeline_mode<synchronous>, transform_indices = @transform_3, window_bounds = array<i64: 384, 128>}, {pipeline_mode = #tpu.pipeline_mode<synchronous>, transform_indices = @transform_4, window_bounds = array<i64: 1, 128>}, {transform_indices = @transform_5, window_bounds = array<i64: 16, 128>}]} {
    %c0 = arith.constant 0 : index
    %c0_0 = arith.constant 0 : index
    %0 = vector.load %arg1[%c0, %c0_0] : memref<16x128xf32, #tpu.memory_space<vmem>>, vector<16x128xf32>
    %1 = arith.truncf %0 : vector<16x128xf32> to vector<16x128xbf16>
    %c0_1 = arith.constant 0 : index
    %c0_2 = arith.constant 0 : index
    %2 = vector.load %arg2[%c0_1, %c0_2] : memref<128x768xbf16, #tpu.memory_space<vmem>>, vector<128x768xbf16>
    %cst = arith.constant dense<0.000000e+00> : vector<16x768xf32>
    %3 = tpu.matmul %1, %2, %cst {dimension_numbers = #tpu.dot_dimension_numbers<[1], [0], [0], [1], [0, 0, 1, 1], [], []>} : vector<16x128xbf16>, vector<128x768xbf16>, vector<16x768xf32> -> vector<16x768xf32>
    %c0_3 = arith.constant 0 : index
    %c0_4 = arith.constant 0 : index
    %4 = vector.load %arg3[%c0_3, %c0_4] : memref<1x768xf32, #tpu.memory_space<vmem>>, vector<1x768xf32>
    %5 = vector.broadcast %4 : vector<1x768xf32> to vector<16x768xf32>
    %6 = arith.addf %3, %5 : vector<16x768xf32>
    %7 = vector.extract_strided_slice %6 {offsets = [0, 0], sizes = [16, 384], strides = [1, 1]} : vector<16x768xf32> to vector<16x384xf32>
    %cst_5 = arith.constant 5.000000e-01 : f32
    %8 = vector.broadcast %cst_5 : f32 to vector<16x384xf32>
    %9 = arith.mulf %8, %7 : vector<16x384xf32>
    %cst_6 = arith.constant 0.707106769 : f32
    %10 = vector.broadcast %cst_6 : f32 to vector<16x384xf32>
    %11 = arith.mulf %7, %10 : vector<16x384xf32>
    %12 = math.absf %11 : vector<16x384xf32>
    %cst_7 = arith.constant 0.327591091 : f32
    %13 = vector.broadcast %cst_7 : f32 to vector<16x384xf32>
    %14 = arith.mulf %13, %12 : vector<16x384xf32>
    %cst_8 = arith.constant 1.000000e+00 : f32
    %15 = vector.broadcast %cst_8 : f32 to vector<16x384xf32>
    %16 = arith.addf %15, %14 : vector<16x384xf32>
    %17 = tpu.reciprocal %16 {approx = true} : vector<16x384xf32> -> vector<16x384xf32>
    %cst_9 = arith.constant 1.06140542 : f32
    %18 = vector.broadcast %cst_9 : f32 to vector<16x384xf32>
    %19 = arith.mulf %18, %17 : vector<16x384xf32>
    %cst_10 = arith.constant -1.45315206 : f32
    %20 = vector.broadcast %cst_10 : f32 to vector<16x384xf32>
    %21 = arith.addf %19, %20 : vector<16x384xf32>
    %22 = arith.mulf %21, %17 : vector<16x384xf32>
    %cst_11 = arith.constant 1.42141378 : f32
    %23 = vector.broadcast %cst_11 : f32 to vector<16x384xf32>
    %24 = arith.addf %22, %23 : vector<16x384xf32>
    %25 = arith.mulf %24, %17 : vector<16x384xf32>
    %cst_12 = arith.constant -0.284496725 : f32
    %26 = vector.broadcast %cst_12 : f32 to vector<16x384xf32>
    %27 = arith.addf %25, %26 : vector<16x384xf32>
    %28 = arith.mulf %27, %17 : vector<16x384xf32>
    %cst_13 = arith.constant 0.254829586 : f32
    %29 = vector.broadcast %cst_13 : f32 to vector<16x384xf32>
    %30 = arith.addf %28, %29 : vector<16x384xf32>
    %31 = arith.mulf %30, %17 : vector<16x384xf32>
    %cst_14 = arith.constant 0.000000e+00 : f32
    %32 = vector.broadcast %cst_14 : f32 to vector<16x384xf32>
    %33 = arith.subf %32, %12 : vector<16x384xf32>
    %34 = arith.mulf %33, %12 : vector<16x384xf32>
    %35 = math.exp %34 : vector<16x384xf32>
    %36 = arith.mulf %31, %35 : vector<16x384xf32>
    %cst_15 = arith.constant 1.000000e+00 : f32
    %37 = vector.broadcast %cst_15 : f32 to vector<16x384xf32>
    %38 = arith.subf %37, %36 : vector<16x384xf32>
    %cst_16 = arith.constant 0.000000e+00 : f32
    %39 = vector.broadcast %cst_16 : f32 to vector<16x384xf32>
    %40 = arith.cmpf oge, %11, %39 : vector<16x384xf32>
    %cst_17 = arith.constant 0.000000e+00 : f32
    %41 = vector.broadcast %cst_17 : f32 to vector<16x384xf32>
    %42 = arith.subf %41, %38 : vector<16x384xf32>
    %43 = arith.select %40, %38, %42 : vector<16x384xi1>, vector<16x384xf32>
    %cst_18 = arith.constant 1.000000e+00 : f32
    %44 = vector.broadcast %cst_18 : f32 to vector<16x384xf32>
    %45 = arith.addf %44, %43 : vector<16x384xf32>
    %46 = arith.mulf %9, %45 : vector<16x384xf32>
    %47 = vector.extract_strided_slice %6 {offsets = [0, 384], sizes = [16, 384], strides = [1, 1]} : vector<16x768xf32> to vector<16x384xf32>
    %48 = arith.mulf %46, %47 : vector<16x384xf32>
    %49 = arith.truncf %48 : vector<16x384xf32> to vector<16x384xbf16>
    %c0_19 = arith.constant 0 : index
    %c0_20 = arith.constant 0 : index
    %50 = vector.load %arg4[%c0_19, %c0_20] : memref<384x128xbf16, #tpu.memory_space<vmem>>, vector<384x128xbf16>
    %cst_21 = arith.constant dense<0.000000e+00> : vector<16x128xf32>
    %51 = tpu.matmul %49, %50, %cst_21 {dimension_numbers = #tpu.dot_dimension_numbers<[1], [0], [0], [1], [0, 0, 1, 1], [], []>} : vector<16x384xbf16>, vector<384x128xbf16>, vector<16x128xf32> -> vector<16x128xf32>
    %c0_22 = arith.constant 0 : index
    %c0_23 = arith.constant 0 : index
    %52 = vector.load %arg5[%c0_22, %c0_23] : memref<1x128xf32, #tpu.memory_space<vmem>>, vector<1x128xf32>
    %53 = vector.broadcast %52 : vector<1x128xf32> to vector<16x128xf32>
    %54 = arith.addf %51, %53 : vector<16x128xf32>
    %c0_24 = arith.constant 0 : index
    %c0_25 = arith.constant 0 : index
    %55 = vector.load %arg6[%c0_24, %c0_25] : memref<16x128xf32, #tpu.memory_space<vmem>>, vector<16x128xf32>
    tpu.vector_store %arg6[%c0_24, %c0_25], %54 {strides = array<i32>} : memref<16x128xf32, #tpu.memory_space<vmem>>, vector<16x128xf32>,
    return
  }
  func.func @transform_0(%arg0: i32) -> (i32, i32) {
    %c0_i32 = arith.constant 0 : i32
    %c0_i32_0 = arith.constant 0 : i32
    return %arg0, %c0_i32 : i32, i32
  }
  func.func @transform_1(%arg0: i32) -> (i32, i32) {
    %c0_i32 = arith.constant 0 : i32
    %c0_i32_0 = arith.constant 0 : i32
    %c0_i32_1 = arith.constant 0 : i32
    return %c0_i32, %c0_i32_0 : i32, i32
  }
  func.func @transform_2(%arg0: i32) -> (i32, i32) {
    %c0_i32 = arith.constant 0 : i32
    %c0_i32_0 = arith.constant 0 : i32
    %c0_i32_1 = arith.constant 0 : i32
    return %c0_i32, %c0_i32_0 : i32, i32
  }
  func.func @transform_3(%arg0: i32) -> (i32, i32) {
    %c0_i32 = arith.constant 0 : i32
    %c0_i32_0 = arith.constant 0 : i32
    %c0_i32_1 = arith.constant 0 : i32
    return %c0_i32, %c0_i32_0 : i32, i32
  }
  func.func @transform_4(%arg0: i32) -> (i32, i32) {
    %c0_i32 = arith.constant 0 : i32
    %c0_i32_0 = arith.constant 0 : i32
    %c0_i32_1 = arith.constant 0 : i32
    return %c0_i32, %c0_i32_0 : i32, i32
  }
  func.func @transform_5(%arg0: i32) -> (i32, i32) {
    %c0_i32 = arith.constant 0 : i32
    %c0_i32_0 = arith.constant 0 : i32
    return %arg0, %c0_i32 : i32, i32
  }
}

module attributes {stable_mosaic.version = 11 : i64} {
  func.func @geglu_kernel(%arg0: i32, %arg1: memref<16x128xf32, #tpu.memory_space<vmem>>, %arg2: memref<128x768xbf16, #tpu.memory_space<vmem>>, %arg3: memref<1x768xf32, #tpu.memory_space<vmem>>, %arg4: memref<384x128xbf16, #tpu.memory_space<vmem>>, %arg5: memref<1x128xf32, #tpu.memory_space<vmem>>, %arg6: memref<16x128xf32, #tpu.memory_space<vmem>>) attributes {dimension_semantics = [#tpu.dimension_semantics<parallel>], iteration_bounds = array<i64: 1>, scalar_prefetch = 0 : i64, scratch_operands = 0 : i64, tpu.core_type = #tpu.core_type<tc>, window_params = [{transform_indices = @transform_0, window_bounds = array<i64: 16, 128>}, {pipeline_mode = #tpu.pipeline_mode<synchronous>, transform_indices = @transform_1, window_bounds = array<i64: 128, 768>}, {pipeline_mode = #tpu.pipeline_mode<synchronous>, transform_indices = @transform_2, window_bounds = array<i64: 1, 768>}, {pipeline_mode = #tpu.pipeline_mode<synchronous>, transform_indices = @transform_3, window_bounds = array<i64: 384, 128>}, {pipeline_mode = #tpu.pipeline_mode<synchronous>, transform_indices = @transform_4, window_bounds = array<i64: 1, 128>}, {transform_indices = @transform_5, window_bounds = array<i64: 16, 128>}]} {
    %c0 = arith.constant 0 : index
    %c0_0 = arith.constant 0 : index
    %0 = vector.load %arg1[%c0, %c0_0] : memref<16x128xf32, #tpu.memory_space<vmem>>, vector<16x128xf32>
    %1 = arith.truncf %0 : vector<16x128xf32> to vector<16x128xbf16>
    %c0_1 = arith.constant 0 : index
    %c0_2 = arith.constant 0 : index
    %2 = vector.load %arg2[%c0_1, %c0_2] : memref<128x768xbf16, #tpu.memory_space<vmem>>, vector<128x768xbf16>
    %cst = arith.constant dense<0.000000e+00> : vector<16x768xf32>
    %3 = tpu.matmul %1, %2, %cst {dimension_numbers = #tpu.dot_dimension_numbers<[1], [0], [0], [1], [0, 0, 1, 1], [], []>} : vector<16x128xbf16>, vector<128x768xbf16>, vector<16x768xf32> -> vector<16x768xf32>
    %c0_3 = arith.constant 0 : index
    %c0_4 = arith.constant 0 : index
    %4 = vector.load %arg3[%c0_3, %c0_4] : memref<1x768xf32, #tpu.memory_space<vmem>>, vector<1x768xf32>
    %5 = vector.broadcast %4 : vector<1x768xf32> to vector<16x768xf32>
    %6 = arith.addf %3, %5 : vector<16x768xf32>
    %7 = vector.extract_strided_slice %6 {offsets = [0, 0], sizes = [16, 384], strides = [1, 1]} : vector<16x768xf32> to vector<16x384xf32>
    %cst_5 = arith.constant 5.000000e-01 : f32
    %8 = vector.broadcast %cst_5 : f32 to vector<16x384xf32>
    %9 = arith.mulf %8, %7 : vector<16x384xf32>
    %cst_6 = arith.constant 0.707106769 : f32
    %10 = vector.broadcast %cst_6 : f32 to vector<16x384xf32>
    %11 = arith.mulf %7, %10 : vector<16x384xf32>
    %12 = math.absf %11 : vector<16x384xf32>
    %cst_7 = arith.constant 0.327591091 : f32
    %13 = vector.broadcast %cst_7 : f32 to vector<16x384xf32>
    %14 = arith.mulf %13, %12 : vector<16x384xf32>
    %cst_8 = arith.constant 1.000000e+00 : f32
    %15 = vector.broadcast %cst_8 : f32 to vector<16x384xf32>
    %16 = arith.addf %15, %14 : vector<16x384xf32>
    %17 = tpu.reciprocal %16 {approx = true} : vector<16x384xf32> -> vector<16x384xf32>
    %cst_9 = arith.constant 1.06140542 : f32
    %18 = vector.broadcast %cst_9 : f32 to vector<16x384xf32>
    %19 = arith.mulf %18, %17 : vector<16x384xf32>
    %cst_10 = arith.constant -1.45315206 : f32
    %20 = vector.broadcast %cst_10 : f32 to vector<16x384xf32>
    %21 = arith.addf %19, %20 : vector<16x384xf32>
    %22 = arith.mulf %21, %17 : vector<16x384xf32>
    %cst_11 = arith.constant 1.42141378 : f32
    %23 = vector.broadcast %cst_11 : f32 to vector<16x384xf32>
    %24 = arith.addf %22, %23 : vector<16x384xf32>
    %25 = arith.mulf %24, %17 : vector<16x384xf32>
    %cst_12 = arith.constant -0.284496725 : f32
    %26 = vector.broadcast %cst_12 : f32 to vector<16x384xf32>
    %27 = arith.addf %25, %26 : vector<16x384xf32>
    %28 = arith.mulf %27, %17 : vector<16x384xf32>
    %cst_13 = arith.constant 0.254829586 : f32
    %29 = vector.broadcast %cst_13 : f32 to vector<16x384xf32>
    %30 = arith.addf %28, %29 : vector<16x384xf32>
    %31 = arith.mulf %30, %17 : vector<16x384xf32>
    %cst_14 = arith.constant 0.000000e+00 : f32
    %32 = vector.broadcast %cst_14 : f32 to vector<16x384xf32>
    %33 = arith.subf %32, %12 : vector<16x384xf32>
    %34 = arith.mulf %33, %12 : vector<16x384xf32>
    %35 = math.exp %34 : vector<16x384xf32>
    %36 = arith.mulf %31, %35 : vector<16x384xf32>
    %cst_15 = arith.constant 1.000000e+00 : f32
    %37 = vector.broadcast %cst_15 : f32 to vector<16x384xf32>
    %38 = arith.subf %37, %36 : vector<16x384xf32>
    %cst_16 = arith.constant 0.000000e+00 : f32
    %39 = vector.broadcast %cst_16 : f32 to vector<16x384xf32>
    %40 = arith.cmpf oge, %11, %39 : vector<16x384xf32>
    %cst_17 = arith.constant 0.000000e+00 : f32
    %41 = vector.broadcast %cst_17 : f32 to vector<16x384xf32>
    %42 = arith.subf %41, %38 : vector<16x384xf32>
    %43 = arith.select %40, %38, %42 : vector<16x384xi1>, vector<16x384xf32>
    %cst_18 = arith.constant 1.000000e+00 : f32
    %44 = vector.broadcast %cst_18 : f32 to vector<16x384xf32>
    %45 = arith.addf %44, %43 : vector<16x384xf32>
    %46 = arith.mulf %9, %45 : vector<16x384xf32>
    %47 = vector.extract_strided_slice %6 {offsets = [0, 384], sizes = [16, 384], strides = [1, 1]} : vector<16x768xf32> to vector<16x384xf32>
    %48 = arith.mulf %46, %47 : vector<16x384xf32>
    %49 = arith.truncf %48 : vector<16x384xf32> to vector<16x384xbf16>
    %c0_19 = arith.constant 0 : index
    %c0_20 = arith.constant 0 : index
    %50 = vector.load %arg4[%c0_19, %c0_20] : memref<384x128xbf16, #tpu.memory_space<vmem>>, vector<384x128xbf16>
    %cst_21 = arith.constant dense<0.000000e+00> : vector<16x128xf32>
    %51 = tpu.matmul %49, %50, %cst_21 {dimension_numbers = #tpu.dot_dimension_numbers<[1], [0], [0], [1], [0, 0, 1, 1], [], []>} : vector<16x384xbf16>, vector<384x128xbf16>, vector<16x128xf32> -> vector<16x128xf32>
    %c0_22 = arith.constant 0 : index
    %c0_23 = arith.constant 0 : index
    %52 = vector.load %arg5[%c0_22, %c0_23] : memref<1x128xf32, #tpu.memory_space<vmem>>, vector<1x128xf32>
    %53 = vector.broadcast %52 : vector<1x128xf32> to vector<16x128xf32>
    %54 = arith.addf %51, %53 : vector<16x128xf32>
    %c0_24 = arith.constant 0 : index
    %c0_25 = arith.constant 0 : index
    %55 = vector.load %arg6[%c0_24, %c0_25] : memref<16x128xf32, #tpu.memory_space<vmem>>, vector<16x128xf32>
    tpu.vector_store %arg6[%c0_24, %c0_25], %54 {strides = array<i32>} : memref<16x128xf32, #tpu.memory_space<vmem>>, vector<16x128xf32>,
    return
  }
  func.func @transform_0(%arg0: i32) -> (i32, i32) {
    %c0_i32 = arith.constant 0 : i32
    %c0_i32_0 = arith.constant 0 : i32
    return %arg0, %c0_i32 : i32, i32
  }
  func.func @transform_1(%arg0: i32) -> (i32, i32) {
    %c0_i32 = arith.constant 0 : i32
    %c0_i32_0 = arith.constant 0 : i32
    %c0_i32_1 = arith.constant 0 : i32
    return %c0_i32, %c0_i32_0 : i32, i32
  }
  func.func @transform_2(%arg0: i32) -> (i32, i32) {
    %c0_i32 = arith.constant 0 : i32
    %c0_i32_0 = arith.constant 0 : i32
    %c0_i32_1 = arith.constant 0 : i32
    return %c0_i32, %c0_i32_0 : i32, i32
  }
  func.func @transform_3(%arg0: i32) -> (i32, i32) {
    %c0_i32 = arith.constant 0 : i32
    %c0_i32_0 = arith.constant 0 : i32
    %c0_i32_1 = arith.constant 0 : i32
    return %c0_i32, %c0_i32_0 : i32, i32
  }
  func.func @transform_4(%arg0: i32) -> (i32, i32) {
    %c0_i32 = arith.constant 0 : i32
    %c0_i32_0 = arith.constant 0 : i32
    %c0_i32_1 = arith.constant 0 : i32
    return %c0_i32, %c0_i32_0 : i32, i32
  }
  func.func @transform_5(%arg0: i32) -> (i32, i32) {
    %c0_i32 = arith.constant 0 : i32
    %c0_i32_0 = arith.constant 0 : i32
    return %arg0, %c0_i32 : i32, i32
  }
}

</mosaic_0001>

<bundles_post_ra>
// kernel: tpu_custom_call.1
= control target key start
LH: loop header
LB: loop body
LE: loop exit
PB: predicated region body
PF: predicated region fallthrough
CT: control target
= control target key end

     0   :  { %10 = vsyncpa [#allocation3], 0  ;;  %s1576_s0 = inlined_call_operand.hbm [shape: f32[16,128], index: 0, kind: input, shape index: {}]   ;;  %s1577_s1 = inlined_call_operand.hbm [shape: bf16[128,768], index: 1, kind: input, shape index: {}]   ;;  %s1578_s2 = inlined_call_operand.vmem [shape: f32[1,768], index: 2, kind: input, shape index: {}]   ;;  %s1579_s3 = inlined_call_operand.hbm [shape: bf16[384,128], index: 3, kind: input, shape index: {}]   ;;  %s1580_s4 = inlined_call_operand.vmem [shape: f32[1,128], index: 4, kind: input, shape index: {}]   ;;  %s1581_s5 = inlined_call_operand.hbm [shape: f32[16,128], index: 5, kind: output, shape index: {}]  }
   0x1   :  { %11 = vsyncpa [#allocation6], 0 }
   0x2   :  { %12 = vsyncpa [#allocation4], 0  ;;  %s1332_s18 = smov [#allocation5]   ;;  %s1238_s22 = scalar_lea.hbm %s1577_s1, 6144 }
   0x3   :  { %s30_s19 = sshll.u32 %s1332_s18, 4  ;;  %p1239_p0 = scmp.ne.s32.totalorder %s1577_s1, %s1238_s22  ;;  %s31_s19 = int_to_ptr.vmem [resolvable:$true] %s30_s19 }
   0x4   :  { %p1242_p1 = scmp.lt.u32.totalorder %s1238_s22, %s1577_s1 }
   0x6   :  { %p1244_p2 = pnand %p1242_p1, %p1239_p0 }
   0x8   :  { %1247 = shalt.err (!%p1244_p2)
}
   0x9   :  { %s1248_s27 = scalar_lea.vmem %s31_s19, 6144  ;;  %p1253_p4 = scmp.lt.s32.totalorder %s31_s19, %s31_s19 }
   0xa   :  { %p1249_p3 = scmp.ne.s32.totalorder %s31_s19, %s1248_s27  ;;  %p1254_p5 = scmp.lt.s32.totalorder %s1248_s27, %s1248_s27 }
   0xc   :  { %p1255_p6 = por %p1254_p5, %p1253_p4 }
   0xe   :  { %p1256_p7 = pnand %p1255_p6, %p1249_p3 }
  0x10   :  { %1259 = shalt.err (!%p1256_p7)
}
  0x11   :  { %s1333_s28 = smov 384   ;;  %s1334_s29 = smov 24  }
  0x12   :  { %36 = dma.hbm_to_vmem [thread:$0]  %s1577_s1, 6144, %s31_s19, [#allocation6], %s1333_s28, %s1333_s28, %s1334_s29  }
  0x13   :  { %s1335_s7 = smov [#allocation2]   ;;  %s1260_s11 = scalar_lea.hbm %s1576_s0, 256 }
  0x14   :  { %s18_s8 = sshll.u32 %s1335_s7, 4  ;;  %p1261_p8 = scmp.ne.s32.totalorder %s1576_s0, %s1260_s11  ;;  %s19_s8 = int_to_ptr.vmem [resolvable:$true] %s18_s8 }
  0x15   :  { %p1264_p9 = scmp.lt.u32.totalorder %s1260_s11, %s1576_s0 }
  0x17   :  { %p1266_p10 = pnand %p1264_p9, %p1261_p8 }
  0x19   :  { %1269 = shalt.err (!%p1266_p10)
}
  0x1a   :  { %s1270_s16 = scalar_lea.vmem %s19_s8, 256  ;;  %p1275_p12 = scmp.lt.s32.totalorder %s19_s8, %s19_s8 }
  0x1b   :  { %p1271_p11 = scmp.ne.s32.totalorder %s19_s8, %s1270_s16  ;;  %p1276_p13 = scmp.lt.s32.totalorder %s1270_s16, %s1270_s16 }
  0x1d   :  { %p1277_p0 = por %p1276_p13, %p1275_p12 }
  0x1f   :  { %p1278_p1 = pnand %p1277_p0, %p1271_p11 }
  0x21   :  { %1281 = shalt.err (!%p1278_p1)
}
  0x22   :  { %s1336_s1 = smov 128   ;;  %s1337_s17 = smov 8  }
  0x23   :  { %24 = dma.hbm_to_vmem [thread:$0]  %s1576_s0, 256, %s19_s8, [#allocation3], %s1336_s1, %s1336_s1, %s1337_s17  }
  0x24   :  { %s1338_s20 = smov [#allocation7]   ;;  %s1282_s24 = scalar_lea.hbm %s1579_s3, 3072 }
  0x25   :  { %s44_s21 = sshll.u32 %s1338_s20, 4  ;;  %p1283_p2 = scmp.ne.s32.totalorder %s1579_s3, %s1282_s24  ;;  %s45_s21 = int_to_ptr.vmem [resolvable:$true] %s44_s21 }
  0x26   :  { %p1286_p3 = scmp.lt.u32.totalorder %s1282_s24, %s1579_s3 }
  0x28   :  { %p1288_p4 = pnand %p1286_p3, %p1283_p2 }
  0x2a   :  { %1291 = shalt.err (!%p1288_p4)
}
  0x2b   :  { %s1292_s29 = scalar_lea.vmem %s45_s21, 3072  ;;  %p1297_p6 = scmp.lt.s32.totalorder %s45_s21, %s45_s21 }
  0x2c   :  { %p1293_p5 = scmp.ne.s32.totalorder %s45_s21, %s1292_s29  ;;  %p1298_p7 = scmp.lt.s32.totalorder %s1292_s29, %s1292_s29 }
  0x2e   :  { %p1299_p8 = por %p1298_p7, %p1297_p6 }
  0x30   :  { %p1300_p9 = pnand %p1299_p8, %p1293_p5 }
  0x32   :  { %1303 = shalt.err (!%p1300_p9)
}
  0x33   :  { %s1339_s0 = smov 64   ;;  %s1340_s30 = smov 4  }
  0x34   :  { %50 = dma.hbm_to_vmem [thread:$0]  %s1579_s3, 3072, %s45_s21, [#allocation6], %s1339_s0, %s1339_s0, %s1340_s30  }
  0x35   :  { %1326 = dma.done.wait [#allocation3], 256  }
  0x36   :  { %1327 = vsyncadd [#allocation3], 4294967040 }
  0x37   :  { %1328 = dma.done.wait [#allocation6], 9216  }
  0x38   :  { %1329 = vsyncadd [#allocation6], 4294958080  ;;  %v1341_v0 = vmov 0   ;;  %v1118_v1 = vld [vmem:[#allocation5 + $0x4] ss:$24 sps:$4 sm:$0xff]   ;;  %v63_v33 = vld [vmem:[#allocation2] sm:$0xff] }
  0x39   :  { %418 = vmatprep.mubr.bf16.mxu0 %v1341_v0  ;;  %461 = vmatprep.mubr.bf16.mxu1 %v1341_v0  ;;  %v1120_v2 = vld [vmem:[#allocation5 + $0xc] ss:$24 sps:$4 sm:$0xff]   ;;  %v1122_v3 = vld [vmem:[#allocation5] ss:$24 sps:$4 sm:$0xff]   ;;  %v1126_v6 = vld [vmem:[#allocation5 + $0x3c] ss:$24 sps:$4 sm:$0xff]  }
  0x3a   :  { %386 = vmatprep.subr.bf16.mxu0 %v1118_v1  ;;  %v1123_v4 = vld [vmem:[#allocation5 + $0x8] ss:$24 sps:$4 sm:$0xff]   ;;  %429 = vmatprep.subr.bf16.mxu1 %v1120_v2  ;;  %v1124_v5 = vld [vmem:[#allocation5 + $0x34] ss:$24 sps:$4 sm:$0xff]   ;;  %v1129_v8 = vld [vmem:[#allocation5 + $0x38] ss:$24 sps:$4 sm:$0xff]  }
  0x3b   :  { %387 = vmatpush1.bf16.msra.mxu0 %v1122_v3  ;;  %430 = vmatpush1.bf16.msra.mxu1 %v1123_v4  ;;  %v1128_v7 = vld [vmem:[#allocation5 + $0x30] ss:$24 sps:$4 sm:$0xff]   ;;  %v1130_v9 = vld [vmem:[#allocation5 + $0x64] ss:$24 sps:$4 sm:$0xff]   ;;  %v1134_v11 = vld [vmem:[#allocation5 + $0x60] ss:$24 sps:$4 sm:$0xff]  }
  0x3c   :  { %388 = vmatprep.subr.bf16.mxu0 %v1124_v5  ;;  %431 = vmatprep.subr.bf16.mxu1 %v1126_v6  ;;  %v1132_v10 = vld [vmem:[#allocation5 + $0x6c] ss:$24 sps:$4 sm:$0xff]   ;;  %v1135_v12 = vld [vmem:[#allocation5 + $0x68] ss:$24 sps:$4 sm:$0xff]   ;;  %v1138_v14 = vld [vmem:[#allocation5 + $0x9c] ss:$24 sps:$4 sm:$0xff]  }
  0x3d   :  { %v1136_v13 = vld [vmem:[#allocation5 + $0x94] ss:$24 sps:$4 sm:$0xff]   ;;  %v1140_v15 = vld [vmem:[#allocation5 + $0x90] ss:$24 sps:$4 sm:$0xff]   ;;  %v1142_v17 = vld [vmem:[#allocation5 + $0xc4] ss:$24 sps:$4 sm:$0xff]  }
  0x3e   :  { %v1141_v16 = vld [vmem:[#allocation5 + $0x98] ss:$24 sps:$4 sm:$0xff]   ;;  %v1144_v18 = vld [vmem:[#allocation5 + $0xcc] ss:$24 sps:$4 sm:$0xff]   ;;  %v1147_v20 = vld [vmem:[#allocation5 + $0xc8] ss:$24 sps:$4 sm:$0xff]  }
  0x3f   :  { %389 = vmatpush1.bf16.msra.mxu0 %v1128_v7  ;;  %432 = vmatpush1.bf16.msra.mxu1 %v1129_v8  ;;  %v1146_v19 = vld [vmem:[#allocation5 + $0xc0] ss:$24 sps:$4 sm:$0xff]   ;;  %v1148_v21 = vld [vmem:[#allocation5 + $0xf4] ss:$24 sps:$4 sm:$0xff]   ;;  %v1152_v23 = vld [vmem:[#allocation5 + $0xf0] ss:$24 sps:$4 sm:$0xff]  }
  0x40   :  { %390 = vmatprep.subr.bf16.mxu0 %v1130_v9  ;;  %433 = vmatprep.subr.bf16.mxu1 %v1132_v10  ;;  %v1150_v22 = vld [vmem:[#allocation5 + $0xfc] ss:$24 sps:$4 sm:$0xff]   ;;  %v1153_v24 = vld [vmem:[#allocation5 + $0xf8] ss:$24 sps:$4 sm:$0xff]   ;;  %v1156_v26 = vld [vmem:[#allocation5 + $0x12c] ss:$24 sps:$4 sm:$0xff]  }
  0x41   :  { %v1154_v25 = vld [vmem:[#allocation5 + $0x124] ss:$24 sps:$4 sm:$0xff]   ;;  %v1158_v27 = vld [vmem:[#allocation5 + $0x120] ss:$24 sps:$4 sm:$0xff]   ;;  %v1160_v29 = vld [vmem:[#allocation5 + $0x154] ss:$24 sps:$4 sm:$0xff]  }
  0x42   :  { %v1159_v28 = vld [vmem:[#allocation5 + $0x128] ss:$24 sps:$4 sm:$0xff]   ;;  %v1162_v30 = vld [vmem:[#allocation5 + $0x15c] ss:$24 sps:$4 sm:$0xff]   ;;  %v1165_v32 = vld [vmem:[#allocation5 + $0x158] ss:$24 sps:$4 sm:$0xff]  }
  0x43   :  { %391 = vmatpush1.bf16.msra.mxu0 %v1134_v11  ;;  %434 = vmatpush1.bf16.msra.mxu1 %v1135_v12  ;;  %v1164_v31 = vld [vmem:[#allocation5 + $0x150] ss:$24 sps:$4 sm:$0xff]   ;;  %v64_v34 = vld [vmem:[#allocation2 + $0x8] sm:$0xff]  ;;  %v1168_v35 = vld [vmem:[#allocation5 + $0x14] ss:$24 sps:$4 sm:$0xff]   ;;  %v1342_v53 = vmov 0.0  }
  0x44   :  { %392 = vmatprep.subr.bf16.mxu0 %v1136_v13  ;;  %435 = vmatprep.subr.bf16.mxu1 %v1138_v14  ;;  %v65_v36 = vpack.c.bf16 %v64_v34, %v63_v33  ;;  %v1166_v37 = vld [vmem:[#allocation5 + $0x10] ss:$24 sps:$4 sm:$0xff]   ;;  %v1171_v38 = vld [vmem:[#allocation5 + $0x44] ss:$24 sps:$4 sm:$0xff]   ;;  %v1169_v39 = vld [vmem:[#allocation5 + $0x40] ss:$24 sps:$4 sm:$0xff]   ;;  %v116_v13 = vlaneseq }
  0x45   :  { %v1174_v40 = vld [vmem:[#allocation5 + $0x74] ss:$24 sps:$4 sm:$0xff]   ;;  %v1172_v41 = vld [vmem:[#allocation5 + $0x70] ss:$24 sps:$4 sm:$0xff]   ;;  %v1177_v42 = vld [vmem:[#allocation5 + $0xa4] ss:$24 sps:$4 sm:$0xff]  }
  0x46   :  { %v1175_v43 = vld [vmem:[#allocation5 + $0xa0] ss:$24 sps:$4 sm:$0xff]   ;;  %v1180_v44 = vld [vmem:[#allocation5 + $0xd4] ss:$24 sps:$4 sm:$0xff]   ;;  %v1178_v45 = vld [vmem:[#allocation5 + $0xd0] ss:$24 sps:$4 sm:$0xff]  }
  0x47   :  { %393 = vmatpush1.bf16.msra.mxu0 %v1140_v15  ;;  %436 = vmatpush1.bf16.msra.mxu1 %v1141_v16  ;;  %v1183_v46 = vld [vmem:[#allocation5 + $0x104] ss:$24 sps:$4 sm:$0xff]   ;;  %v1181_v47 = vld [vmem:[#allocation5 + $0x100] ss:$24 sps:$4 sm:$0xff]   ;;  %v1186_v48 = vld [vmem:[#allocation5 + $0x134] ss:$24 sps:$4 sm:$0xff]  }
  0x48   :  { %394 = vmatprep.subr.bf16.mxu0 %v1142_v17  ;;  %437 = vmatprep.subr.bf16.mxu1 %v1144_v18  ;;  %v1184_v49 = vld [vmem:[#allocation5 + $0x130] ss:$24 sps:$4 sm:$0xff]   ;;  %v1189_v50 = vld [vmem:[#allocation5 + $0x164] ss:$24 sps:$4 sm:$0xff]   ;;  %v1187_v51 = vld [vmem:[#allocation5 + $0x160] ss:$24 sps:$4 sm:$0xff]  }
  0x49   :  { %v1190_v52 = vld [vmem:[#allocation7 + $0x80] sm:$0xff]   ;;  %v1193_v56 = vld [vmem:[#allocation7 + $0x88] sm:$0xff]   ;;  %v1196_v59 = vld [vmem:[#allocation7 + $0x90] sm:$0xff]   ;;  %vm1343_vm0 = vmmov 0   ;;  %v1417_v14 = vshrl.u32 %v116_v13, 7  ;;  %s1344_s10 = smov [#allocation8]  }
  0x4a   :  { %v1191_v54 = vld [vmem:[#allocation7 + $0x40] sm:$0xff]   ;;  %v1194_v57 = vld [vmem:[#allocation7 + $0x48] sm:$0xff]   ;;  %v1197_v60 = vld [vmem:[#allocation7 + $0x50] sm:$0xff]   ;;  %s968_s11 = sshll.u32 %s1344_s10, 4  ;;  %s969_s11 = int_to_ptr.vmem [resolvable:$true] %s968_s11 }
  0x4b   :  { %395 = vmatpush1.bf16.msra.mxu0 %v1146_v19  ;;  %438 = vmatpush1.bf16.msra.mxu1 %v1147_v20  ;;  %v1192_v55 = vld [vmem:[#allocation7] sm:$0xff]   ;;  %v1195_v58 = vld [vmem:[#allocation7 + $0x8] sm:$0xff]   ;;  %v1198_v61 = vld [vmem:[#allocation7 + $0x10] sm:$0xff]   ;;  %v118_v15 = vsub.s32 0, %v1417_v14  ;;  %v126_v16 = vsub.s32 2, %v1417_v14  ;;  %v122_v18 = vsub.s32 1, %v1417_v14  ;;  %p1309_p11 = scmp.lt.s32.totalorder %s969_s11, %s969_s11 }
  0x4c   :  { %396 = vmatprep.subr.bf16.mxu0 %v1148_v21  ;;  %439 = vmatprep.subr.bf16.mxu1 %v1150_v22  ;;  %v1199_v62 = vld [vmem:[#allocation7 + $0x98] sm:$0xff]   ;;  %v1202_v1 = vld [vmem:[#allocation7 + $0xa0] sm:$0xff]   ;;  %v1205_v4 = vld [vmem:[#allocation7 + $0xa8] sm:$0xff]   ;;  %s1304_s12 = scalar_lea.vmem %s969_s11, 256 }
  0x4d   :  { %v1200_v63 = vld [vmem:[#allocation7 + $0x58] sm:$0xff]   ;;  %v1203_v2 = vld [vmem:[#allocation7 + $0x60] sm:$0xff]   ;;  %v1206_v5 = vld [vmem:[#allocation7 + $0x68] sm:$0xff]   ;;  %p1305_p10 = scmp.ne.s32.totalorder %s969_s11, %s1304_s12  ;;  %p1310_p12 = scmp.lt.s32.totalorder %s1304_s12, %s1304_s12 }
  0x4e   :  { %v1204_v3 = vld [vmem:[#allocation7 + $0x20] sm:$0xff]   ;;  %v1207_v6 = vld [vmem:[#allocation7 + $0x28] sm:$0xff]   ;;  %v1208_v7 = vld [vmem:[#allocation7 + $0xb0] sm:$0xff]  }
  0x4f   :  { %397 = vmatpush1.bf16.msra.mxu0 %v1152_v23  ;;  %440 = vmatpush1.bf16.msra.mxu1 %v1153_v24  ;;  %v1209_v8 = vld [vmem:[#allocation7 + $0x70] sm:$0xff]   ;;  %v1211_v10 = vld [vmem:[#allocation7 + $0xb8] sm:$0xff]   ;;  %p1311_p13 = por %p1310_p12, %p1309_p11 }
  0x50   :  { %398 = vmatprep.subr.bf16.mxu0 %v1154_v25  ;;  %441 = vmatprep.subr.bf16.mxu1 %v1156_v26  ;;  %v1210_v9 = vld [vmem:[#allocation7 + $0x30] sm:$0xff]   ;;  %v1212_v11 = vld [vmem:[#allocation7 + $0x78] sm:$0xff]  }
  0x51   :  { %v1213_v12 = vld [vmem:[#allocation7 + $0x38] sm:$0xff]   ;;  %v1424_v17 = vld [vmem:[%s1578_s2] sm:$0x3f]  ;;  %p1312_p0 = pnand %p1311_p13, %p1305_p10 }
  0x52   :  { %v119_v19 = vrot.slane %v1424_v17, %v118_v15  ;;  %v127_v20 = vrot.slane %v1424_v17, %v126_v16  ;;  %v123_v21 = vrot.slane %v1424_v17, %v122_v18 }
  0x53   :  { %399 = vmatpush1.bf16.msra.mxu0 %v1158_v27  ;;  %442 = vmatpush1.bf16.msra.mxu1 %v1159_v28 }
  0x54   :  { %400 = vmatprep.subr.bf16.mxu0 %v1160_v29  ;;  %443 = vmatprep.subr.bf16.mxu1 %v1162_v30 }
  0x57   :  { %401 = vmatpush1.bf16.msra.mxu0 %v1164_v31  ;;  %444 = vmatpush1.bf16.msra.mxu1 %v1165_v32 }
  0x58   :  { %472 = vmatprep.subr.bf16.mxu0 %v1168_v35  ;;  %1054 = vmatprep.subr.bf16.mxu1 %v1191_v54 }
  0x5a   :  { %419 = vmatmul.mubr.bf16.vlgmr.msra.gmra.mrb[0].mxu0 %v65_v36  ;;  %462 = vmatmul.mubr.bf16.vlgmr.msra.gmra.mrb[0].mxu1 %v65_v36 }
  0x5b   :  { %473 = vmatpush1.bf16.msra.mxu0 %v1166_v37  ;;  %504 = vmatprep.mubr.bf16.mxu0 %v1341_v0  ;;  %v1201_v0 = vld [vmem:[#allocation7 + $0x18] sm:$0xff]  }
  0x5c   :  { %474 = vmatprep.subr.bf16.mxu0 %v1171_v38  ;;  %1055 = vmatpush3.bf16.msra.mxu1 %v1192_v55 }
  0x5d   :  { %1056 = vmatprep.subr.bf16.mxu1 %v1194_v57 }
  0x5f   :  { %475 = vmatpush1.bf16.msra.mxu0 %v1169_v39 }
  0x60   :  { %476 = vmatprep.subr.bf16.mxu0 %v1174_v40  ;;  %1057 = vmatpush3.bf16.msra.mxu1 %v1195_v58 }
  0x61   :  { %1058 = vmatprep.subr.bf16.mxu1 %v1197_v60 }
  0x63   :  { %477 = vmatpush1.bf16.msra.mxu0 %v1172_v41 }
  0x64   :  { %478 = vmatprep.subr.bf16.mxu0 %v1177_v42  ;;  %1059 = vmatpush3.bf16.msra.mxu1 %v1198_v61 }
  0x65   :  { %1060 = vmatprep.subr.bf16.mxu1 %v1200_v63 }
  0x67   :  { %479 = vmatpush1.bf16.msra.mxu0 %v1175_v43 }
  0x68   :  { %480 = vmatprep.subr.bf16.mxu0 %v1180_v44  ;;  %1061 = vmatpush3.bf16.msra.mxu1 %v1201_v0 }
  0x69   :  { %1062 = vmatprep.subr.bf16.mxu1 %v1203_v2 }
  0x6b   :  { %481 = vmatpush1.bf16.msra.mxu0 %v1178_v45 }
  0x6c   :  { %482 = vmatprep.subr.bf16.mxu0 %v1183_v46  ;;  %1063 = vmatpush3.bf16.msra.mxu1 %v1204_v3 }
  0x6d   :  { %1064 = vmatprep.subr.bf16.mxu1 %v1206_v5 }
  0x6f   :  { %483 = vmatpush1.bf16.msra.mxu0 %v1181_v47 }
  0x70   :  { %484 = vmatprep.subr.bf16.mxu0 %v1186_v48  ;;  %1065 = vmatpush3.bf16.msra.mxu1 %v1207_v6 }
  0x71   :  { %1066 = vmatprep.subr.bf16.mxu1 %v1209_v8 }
  0x73   :  { %485 = vmatpush1.bf16.msra.mxu0 %v1184_v49 }
  0x74   :  { %486 = vmatprep.subr.bf16.mxu0 %v1189_v50  ;;  %1067 = vmatpush3.bf16.msra.mxu1 %v1210_v9 }
  0x75   :  { %1068 = vmatprep.subr.bf16.mxu1 %v1212_v11 }
  0x77   :  { %487 = vmatpush1.bf16.msra.mxu0 %v1187_v51 }
  0x78   :  { %1085 = vmatprep.subr.bf16.mxu0 %v1342_v53  ;;  %1069 = vmatpush3.bf16.msra.mxu1 %v1213_v12  ;;  %v130_v12 = vsub.s32 3, %v1417_v14 }
  0x7a   :  { %505 = vmatmul.mubr.bf16.vlgmr.msra.gmra.mrb[4].mxu0 %v65_v36 }
  0x7b   :  { %1086 = vmatpush3.bf16.msra.mxu0 %v1190_v52  ;;  %1101 = vmatprep.mubr.msk.bf16.mxu0 %vm1343_vm0, %v1342_v53 }
  0x7c   :  { %1087 = vmatprep.subr.bf16.mxu0 %v1342_v53 }
  0x7f   :  { %1088 = vmatpush3.bf16.msra.mxu0 %v1193_v56 }
  0x80   :  { %1089 = vmatprep.subr.bf16.mxu0 %v1342_v53 }
  0x83   :  { %1090 = vmatpush3.bf16.msra.mxu0 %v1196_v59 }
  0x84   :  { %1091 = vmatprep.subr.bf16.mxu0 %v1342_v53 }
  0x87   :  { %1092 = vmatpush3.bf16.msra.mxu0 %v1199_v62 }
  0x88   :  { %1093 = vmatprep.subr.bf16.mxu0 %v1342_v53 }
  0x8b   :  { %1094 = vmatpush3.bf16.msra.mxu0 %v1202_v1 }
  0x8c   :  { %1095 = vmatprep.subr.bf16.mxu0 %v1342_v53 }
  0x8f   :  { %1096 = vmatpush3.bf16.msra.mxu0 %v1205_v4 }
  0x90   :  { %1097 = vmatprep.subr.bf16.mxu0 %v1342_v53 }
  0x93   :  { %1098 = vmatpush3.bf16.msra.mxu0 %v1208_v7 }
  0x94   :  { %1099 = vmatprep.subr.bf16.mxu0 %v1342_v53 }
  0x97   :  { %1100 = vmatpush3.bf16.msra.mxu0 %v1211_v10 }
 0x12d   :  { %v420_v22 = vpop.f32.mrb[0].mxu0  ;;  %v463_v23 = vpop.f32.mrb[0].mxu1 }
 0x12e   :  { %v1430_v24 = vadd.f32 %v420_v22, %v119_v19  ;;  %v1432_v25 = vadd.f32 %v463_v23, %v127_v20  ;;  %v422_v26 = vpop.f32.mrb[1].mxu0  ;;  %v1434_v27 = vpop.f32.mrb[1].mxu1 }
 0x12f   :  { %v1436_v28 = vadd.f32 %v422_v26, %v123_v21  ;;  %v424_v29 = vpop.f32.mrb[2].mxu0  ;;  %v467_v30 = vpop.f32.mrb[2].mxu1 }
 0x130   :  { %v1439_v31 = vmul.f32 0.70710677, %v1430_v24  ;;  %v1442_v32 = vmul.f32 0.70710677, %v1432_v25  ;;  %v1447_v34 = vadd.f32 %v424_v29, %v119_v19  ;;  %v426_v35 = vpop.f32.mrb[3].mxu0  ;;  %v1449_v36 = vpop.f32.mrb[3].mxu1  ;;  %v1458_v47 = vadd.f32 %v467_v30, %v127_v20 }
 0x131   :  { %v1445_v33 = vmul.f32 0.70710677, %v1436_v28  ;;  %v1463_v52 = vadd.f32 %v426_v35, %v123_v21  ;;  %v138_v20 = vsub.s32 5, %v1417_v14  ;;  %v134_v30 = vsub.s32 4, %v1417_v14 }
 0x132   :  { %v527_v37 = vand.u32 2147483647, %v1439_v31  ;;  %v529_v38 = vand.u32 2147483647, %v1442_v32  ;;  %v1455_v40 = vmul.f32 0.70710677, %v1447_v34 }
 0x133   :  { %v528_v39 = vand.u32 2147483647, %v1445_v33  ;;  %v1461_v51 = vmul.f32 0.70710677, %v1458_v47  ;;  %v1467_v55 = vmul.f32 0.70710677, %v1463_v52 }
 0x134   :  { %v533_v41 = vmul.f32 0.3275911, %v527_v37  ;;  %v535_v42 = vmul.f32 0.3275911, %v529_v38  ;;  %v530_v44 = vand.u32 2147483647, %v1455_v40 }
 0x135   :  { %v534_v43 = vmul.f32 0.3275911, %v528_v39  ;;  %v532_v53 = vand.u32 2147483647, %v1461_v51  ;;  %v605_v54 = vsub.f32 0.0, %v527_v37  ;;  %v607_v56 = vsub.f32 0.0, %v529_v38 }
 0x136   :  { %v539_v45 = vadd.f32 1.0, %v533_v41  ;;  %v541_v46 = vadd.f32 1.0, %v535_v42  ;;  %v536_v48 = vmul.f32 0.3275911, %v530_v44  ;;  %v531_v58 = vand.u32 2147483647, %v1467_v55 }
 0x137   :  { %v540_v49 = vadd.f32 1.0, %v534_v43  ;;  %v538_v57 = vmul.f32 0.3275911, %v532_v53  ;;  %v611_v60 = vmul.f32 %v605_v54, %v527_v37  ;;  %v613_v63 = vmul.f32 %v607_v56, %v529_v38 }
 0x138   :  { %1214 = vrcp.f32 %v539_v45  ;;  %v542_v50 = vadd.f32 1.0, %v536_v48  ;;  %v537_v61 = vmul.f32 0.3275911, %v531_v58  ;;  %v606_v0 = vsub.f32 0.0, %v528_v39 }
 0x139   :  { %1216 = vrcp.f32 %v541_v46  ;;  %v544_v59 = vadd.f32 1.0, %v538_v57  ;;  %v608_v4 = vsub.f32 0.0, %v530_v44  ;;  %v617_v6 = vmul.f32 1.442695, %v611_v60 }
 0x13a   :  { %1218 = vrcp.f32 %v540_v49  ;;  %v543_v3 = vadd.f32 1.0, %v537_v61  ;;  %v621_v9 = vmul.f32 1.442695, %v613_v63  ;;  %v612_v10 = vmul.f32 %v606_v0, %v528_v39 }
 0x13b   :  { %1220 = vrcp.f32 %v542_v50  ;;  %v614_v18 = vmul.f32 %v608_v4, %v530_v44  ;;  %v610_v19 = vsub.f32 0.0, %v532_v53  ;;  %v609_v38 = vsub.f32 0.0, %v531_v58 }
 0x13c   :  { %1222 = vrcp.f32 %v544_v59  ;;  %v619_v29 = vmul.f32 1.442695, %v612_v10  ;;  %v1492_v43 = vrot.slane %v1424_v17, %v130_v12  ;;  %v1495_v45 = vrot.slane %v1424_v17, %v138_v20 }
 0x13d   :  { %1224 = vrcp.f32 %v543_v3  ;;  %v623_v44 = vmul.f32 1.442695, %v614_v18  ;;  %v616_v14 = vmul.f32 %v610_v19, %v532_v53  ;;  %v1502_v56 = vrot.slane %v1424_v17, %v134_v30 }
 0x13e   :  { %1226 = vpow2.f32 %v617_v6  ;;  %v615_v0 = vmul.f32 %v609_v38, %v531_v58  ;;  %v466_v58 = vadd.f32 %v1434_v27, %v1492_v43  ;;  %vm641_vm1 = vcmp.ge.f32.partialorder %v1439_v31, 0.0 }
 0x13f   :  { %1228 = vpow2.f32 %v621_v9  ;;  %v627_v9 = vmul.f32 1.442695, %v616_v14  ;;  %v516_v14 = vmul.f32 0.5, %v1436_v28  ;;  %vm643_vm2 = vcmp.ge.f32.partialorder %v1442_v32, 0.0 }
 0x140   :  { %1230 = vpow2.f32 %v619_v29  ;;  %v625_v20 = vmul.f32 1.442695, %v615_v0  ;;  %vm642_vm3 = vcmp.ge.f32.partialorder %v1445_v33, 0.0  ;;  %vm644_vm4 = vcmp.ge.f32.partialorder %v1455_v40, 0.0 }
 0x141   :  { %1232 = vpow2.f32 %v623_v44  ;;  %v518_v40 = vmul.f32 0.5, %v1447_v34  ;;  %vm646_vm5 = vcmp.ge.f32.partialorder %v1461_v51, 0.0  ;;  %v520_v34 = vmul.f32 0.5, %v1458_v47 }
 0x142   :  { %v1470_v62 = vpop.eup %1214  ;;  %1234 = vpow2.f32 %v627_v9  ;;  %vm645_vm6 = vcmp.ge.f32.partialorder %v1467_v55, 0.0 }
 0x143   :  { %v1472_v1 = vpop.eup %1216  ;;  %v551_v2 = vmul.f32 1.0614054, %v1470_v62  ;;  %1236 = vpow2.f32 %v625_v20 }
 0x144   :  { %v553_v5 = vmul.f32 1.0614054, %v1472_v1  ;;  %v1476_v8 = vpop.eup %1218 }
 0x145   :  { %v557_v7 = vadd.f32 -1.4531521, %v551_v2  ;;  %v552_v15 = vmul.f32 1.0614054, %v1476_v8  ;;  %v1481_v16 = vpop.eup %1220 }
 0x146   :  { %v559_v11 = vadd.f32 -1.4531521, %v553_v5  ;;  %v554_v23 = vmul.f32 1.0614054, %v1481_v16  ;;  %v1489_v42 = vpop.eup %1222 }
 0x147   :  { %v563_v13 = vmul.f32 %v1470_v62, %v557_v7  ;;  %v558_v26 = vadd.f32 -1.4531521, %v552_v15  ;;  %v556_v60 = vmul.f32 1.0614054, %v1489_v42  ;;  %v1507_v61 = vpop.eup %1224 }
 0x148   :  { %v565_v21 = vmul.f32 %v1472_v1, %v559_v11  ;;  %v560_v39 = vadd.f32 -1.4531521, %v554_v23  ;;  %v555_v17 = vmul.f32 1.0614054, %v1507_v61  ;;  %v1227_v18 = vpop.eup %1226 }
 0x149   :  { %v569_v22 = vadd.f32 1.4214138, %v563_v13  ;;  %v564_v41 = vmul.f32 %v1476_v8, %v558_v26  ;;  %v562_v6 = vadd.f32 -1.4531521, %v556_v60  ;;  %v1229_v23 = vpop.eup %1228  ;;  %v515_v26 = vmul.f32 0.5, %v1430_v24 }
 0x14a   :  { %v571_v35 = vadd.f32 1.4214138, %v565_v21  ;;  %v566_v49 = vmul.f32 %v1481_v16, %v560_v39  ;;  %v561_v13 = vadd.f32 -1.4531521, %v555_v17  ;;  %v517_v39 = vmul.f32 0.5, %v1432_v25 }
 0x14b   :  { %v575_v37 = vmul.f32 %v1470_v62, %v569_v22  ;;  %v570_v54 = vadd.f32 1.4214138, %v564_v41  ;;  %v568_v15 = vmul.f32 %v1489_v42, %v562_v6 }
 0x14c   :  { %v577_v46 = vmul.f32 %v1472_v1, %v571_v35  ;;  %v572_v53 = vadd.f32 1.4214138, %v566_v49  ;;  %v567_v30 = vmul.f32 %v1507_v61, %v561_v13 }
 0x14d   :  { %v581_v48 = vadd.f32 -0.28449672, %v575_v37  ;;  %v1499_v50 = vpop.f32.mrb[4].mxu0  ;;  %v576_v2 = vmul.f32 %v1476_v8, %v570_v54  ;;  %v574_v35 = vadd.f32 1.4214138, %v568_v15 }
 0x14e   :  { %v1504_v57 = vpop.f32.mrb[5].mxu0  ;;  %v583_v59 = vadd.f32 -0.28449672, %v577_v46  ;;  %v578_v10 = vmul.f32 %v1481_v16, %v572_v53  ;;  %v573_v41 = vadd.f32 1.4214138, %v567_v30  ;;  %v507_v20 = vadd.f32 %v1499_v50, %v1502_v56 }
 0x14f   :  { %v587_v63 = vmul.f32 %v1470_v62, %v581_v48  ;;  %v1511_v3 = vpop.f32.mrb[6].mxu0  ;;  %v582_v11 = vadd.f32 -0.28449672, %v576_v2  ;;  %v580_v44 = vmul.f32 %v1489_v42, %v574_v35  ;;  %v470_v50 = vadd.f32 %v1449_v36, %v1492_v43 }
 0x150   :  { %v589_v4 = vmul.f32 %v1472_v1, %v583_v59  ;;  %v1515_v5 = vpop.f32.mrb[7].mxu0  ;;  %v584_v21 = vadd.f32 -0.28449672, %v578_v10  ;;  %v579_v54 = vmul.f32 %v1507_v61, %v573_v41  ;;  %v519_v36 = vmul.f32 0.5, %v1463_v52  ;;  %v1029_v52 = vld [vmem:[%s1580_s4] ss:$0 sm:$0xff] }
 0x151   :  { %v593_v7 = vadd.f32 0.2548296, %v587_v63  ;;  %v588_v22 = vmul.f32 %v1476_v8, %v582_v11  ;;  %v586_v59 = vadd.f32 -0.28449672, %v580_v44  ;;  %v509_v11 = vadd.f32 %v1504_v57, %v1495_v45 }
 0x152   :  { %v595_v12 = vadd.f32 0.2548296, %v589_v4  ;;  %v590_v37 = vmul.f32 %v1481_v16, %v584_v21  ;;  %v585_v2 = vadd.f32 -0.28449672, %v579_v54  ;;  %v511_v51 = vadd.f32 %v1511_v3, %v1502_v56 }
 0x153   :  { %v599_v19 = vmul.f32 %v1470_v62, %v593_v7  ;;  %v594_v38 = vadd.f32 0.2548296, %v588_v22 }
 0x154   :  { %v601_v29 = vmul.f32 %v1472_v1, %v595_v12  ;;  %v596_v48 = vadd.f32 0.2548296, %v590_v37  ;;  %v1231_v1 = vpop.eup %1230  ;;  %v591_v31 = vmul.f32 %v1507_v61, %v585_v2 }
 0x155   :  { %v629_v27 = vmul.f32 %v1227_v18, %v599_v19  ;;  %v600_v24 = vmul.f32 %v1476_v8, %v594_v38  ;;  %v1233_v0 = vpop.eup %1232  ;;  %v592_v8 = vmul.f32 %v1489_v42, %v586_v59 }
 0x156   :  { %v631_v62 = vmul.f32 %v1229_v23, %v601_v29  ;;  %v602_v25 = vmul.f32 %v1481_v16, %v596_v48  ;;  %v597_v13 = vadd.f32 0.2548296, %v591_v31  ;;  %v1235_v18 = vpop.eup %1234  ;;  %v513_v48 = vadd.f32 %v1515_v5, %v1495_v45 }
 0x157   :  { %v635_v46 = vsub.f32 1.0, %v629_v27  ;;  %v630_v63 = vmul.f32 %v1231_v1, %v600_v24  ;;  %v598_v9 = vadd.f32 0.2548296, %v592_v8 }
 0x158   :  { %v637_v49 = vsub.f32 1.0, %v631_v62  ;;  %v632_v4 = vmul.f32 %v1233_v0, %v602_v25  ;;  %v603_v57 = vmul.f32 %v1507_v61, %v597_v13 }
 0x159   :  { %v647_v60 = vsub.f32 0.0, %v635_v46  ;;  %v636_v17 = vsub.f32 1.0, %v630_v63  ;;  %v604_v15 = vmul.f32 %v1489_v42, %v598_v9 }
 0x15a   :  { %v649_v53 = vsub.f32 0.0, %v637_v49  ;;  %v638_v10 = vsub.f32 1.0, %v632_v4 }
 0x15b   :  { %v653_v28 = vsel %vm641_vm1, %v635_v46, %v647_v60  ;;  %v648_v16 = vsub.f32 0.0, %v636_v17  ;;  %v634_v30 = vmul.f32 %v1235_v18, %v604_v15 }
 0x15c   :  { %v659_v6 = vadd.f32 1.0, %v653_v28  ;;  %v655_v7 = vsel %vm643_vm2, %v637_v49, %v649_v53  ;;  %v650_v19 = vsub.f32 0.0, %v638_v10 }
 0x15d   :  { %v661_v32 = vadd.f32 1.0, %v655_v7  ;;  %v654_v21 = vsel %vm642_vm3, %v636_v17, %v648_v16  ;;  %v640_v62 = vsub.f32 1.0, %v634_v30 }
 0x15e   :  { %v665_v12 = vmul.f32 %v659_v6, %v515_v26  ;;  %v660_v29 = vadd.f32 1.0, %v654_v21  ;;  %v1237_v26 = vpop.eup %1236  ;;  %v656_v35 = vsel %vm644_vm4, %v638_v10, %v650_v19 }
 0x15f   :  { %v667_v22 = vmul.f32 %v661_v32, %v517_v39  ;;  %v662_v42 = vadd.f32 1.0, %v656_v35  ;;  %v633_v38 = vmul.f32 %v1237_v26, %v603_v57 }
 0x160   :  { %v671_v23 = vmul.f32 %v665_v12, %v466_v58  ;;  %v666_v37 = vmul.f32 %v660_v29, %v516_v14  ;;  %v652_v58 = vsub.f32 0.0, %v640_v62 }
 0x161   :  { %v673_v27 = vmul.f32 %v667_v22, %v509_v11  ;;  %v668_v33 = vmul.f32 %v662_v42, %v518_v40  ;;  %v639_v39 = vsub.f32 1.0, %v633_v38 }
 0x162   :  { %v672_v41 = vmul.f32 %v666_v37, %v507_v20  ;;  %v658_v46 = vsel %vm646_vm5, %v640_v62, %v652_v58 }
 0x163   :  { %v674_v61 = vmul.f32 %v668_v33, %v470_v50  ;;  %v651_v44 = vsub.f32 0.0, %v639_v39  ;;  %v664_v24 = vadd.f32 1.0, %v658_v46 }
 0x165   :  { %v677_v1 = vpack.c.bf16 %v674_v61, %v671_v23  ;;  %v657_v14 = vsel %vm645_vm6, %v639_v39, %v651_v44  ;;  %v670_v49 = vmul.f32 %v664_v24, %v520_v34 }
 0x166   :  { %v663_v43 = vadd.f32 1.0, %v657_v14 }
 0x167   :  { %v676_v59 = vmul.f32 %v670_v49, %v513_v48 }
 0x168   :  { %v669_v54 = vmul.f32 %v663_v43, %v519_v36 }
 0x169   :  { %v679_v25 = vpack.c.bf16 %v676_v59, %v673_v27 }
 0x16a   :  { %v675_v60 = vmul.f32 %v669_v54, %v511_v51 }
 0x16b   :  { %1102 = vmatmul.mubr.bf16.vlgmr.msra.gmra.mrb[8].mxu0 %v679_v25 }
 0x16c   :  { %v678_v47 = vpack.c.bf16 %v675_v60, %v672_v41 }
 0x16e   :  { %911 = vmatprep.mubr.bf16.mxu1 %v678_v47 }
 0x16f   :  { %912 = vmatmul.mubr.bf16.vlgmr.msra.gmra.mrb[4].mxu1 %v677_v1 }
 0x23e   :  { %v954_v55 = vpop.f32.mrb[8].mxu0 }
 0x23f   :  { %v1103_v45 = vpop.f32.mrb[9].mxu0 }
 0x240   :  { %v957_v5 = vpop.f32.mrb[10].mxu0 }
 0x241   :  { %v1104_v0 = vpop.f32.mrb[11].mxu0 }
 0x242   :  { %v1070_v63 = vpop.f32.mrb[4].mxu1 }
 0x243   :  { %v1071_v53 = vpop.f32.mrb[5].mxu1 }
 0x244   :  { %v1072_v2 = vadd.f32 %v1071_v53, %v1070_v63  ;;  %v1073_v56 = vpop.f32.mrb[6].mxu1 }
 0x245   :  { %v1074_v3 = vpop.f32.mrb[7].mxu1 }
 0x246   :  { %v914_v8 = vadd.f32 %v1072_v2, %v1029_v52  ;;  %v1075_v28 = vadd.f32 %v1074_v3, %v1073_v56 }
 0x248   :  { %v955_v4 = vadd.f32 %v954_v55, %v914_v8  ;;  %v917_v17 = vadd.f32 %v1075_v28, %v1029_v52 }
 0x24a   :  { %961 = vst [vmem:[#allocation8] sm:$0xff] %v955_v4  ;;  %v958_v6 = vadd.f32 %v957_v5, %v917_v17 }
 0x24c   :  { %962 = vst [vmem:[#allocation8 + $0x8] sm:$0xff] %v958_v6 }
 0x24d   :  { %1315 = shalt.err (!%p1312_p0)
}
 0x24e   :  { %s1316_s14 = scalar_lea.hbm %s1581_s5, 256 }
 0x24f   :  { %p1317_p1 = scmp.ne.s32.totalorder %s1581_s5, %s1316_s14  ;;  %p1320_p2 = scmp.lt.u32.totalorder %s1316_s14, %s1581_s5 }
 0x251   :  { %p1322_p3 = pnand %p1320_p2, %p1317_p1 }
 0x253   :  { %1325 = shalt.err (!%p1322_p3)
}
 0x254   :  { %974 = dma.vmem_to_hbm [thread:$0]  %s969_s11, 256, %s1581_s5, [#allocation4], %s1336_s1, %s1336_s1, %s1337_s17  }
 0x255   :  { %1330 = dma.done.wait [#allocation4], 256  }
 0x256   :  { %1331 = vsyncadd [#allocation4], 4294967040 }
 0x257   :  { %978 = vsyncpa [#allocation3], 1 }
 0x258   :  { %979 = vsyncpa [#allocation6], 1 }
 0x259   :  { %980 = vsyncpa [#allocation4], 1 }

// kernel: tpu_custom_call.1
= control target key start
LH: loop header
LB: loop body
LE: loop exit
PB: predicated region body
PF: predicated region fallthrough
CT: control target
= control target key end

     0   :  { %10 = vsyncpa [#allocation3], 0  ;;  %s1576_s0 = inlined_call_operand.hbm [shape: f32[16,128], index: 0, kind: input, shape index: {}]   ;;  %s1577_s1 = inlined_call_operand.hbm [shape: bf16[128,768], index: 1, kind: input, shape index: {}]   ;;  %s1578_s2 = inlined_call_operand.vmem [shape: f32[1,768], index: 2, kind: input, shape index: {}]   ;;  %s1579_s3 = inlined_call_operand.hbm [shape: bf16[384,128], index: 3, kind: input, shape index: {}]   ;;  %s1580_s4 = inlined_call_operand.vmem [shape: f32[1,128], index: 4, kind: input, shape index: {}]   ;;  %s1581_s5 = inlined_call_operand.hbm [shape: f32[16,128], index: 5, kind: output, shape index: {}]  }
   0x1   :  { %11 = vsyncpa [#allocation6], 0 }
   0x2   :  { %12 = vsyncpa [#allocation4], 0  ;;  %s1332_s18 = smov [#allocation5]   ;;  %s1238_s22 = scalar_lea.hbm %s1577_s1, 6144 }
   0x3   :  { %s30_s19 = sshll.u32 %s1332_s18, 4  ;;  %p1239_p0 = scmp.ne.s32.totalorder %s1577_s1, %s1238_s22  ;;  %s31_s19 = int_to_ptr.vmem [resolvable:$true] %s30_s19 }
   0x4   :  { %p1242_p1 = scmp.lt.u32.totalorder %s1238_s22, %s1577_s1 }
   0x6   :  { %p1244_p2 = pnand %p1242_p1, %p1239_p0 }
   0x8   :  { %1247 = shalt.err (!%p1244_p2)
}
   0x9   :  { %s1248_s27 = scalar_lea.vmem %s31_s19, 6144  ;;  %p1253_p4 = scmp.lt.s32.totalorder %s31_s19, %s31_s19 }
   0xa   :  { %p1249_p3 = scmp.ne.s32.totalorder %s31_s19, %s1248_s27  ;;  %p1254_p5 = scmp.lt.s32.totalorder %s1248_s27, %s1248_s27 }
   0xc   :  { %p1255_p6 = por %p1254_p5, %p1253_p4 }
   0xe   :  { %p1256_p7 = pnand %p1255_p6, %p1249_p3 }
  0x10   :  { %1259 = shalt.err (!%p1256_p7)
}
  0x11   :  { %s1333_s28 = smov 384   ;;  %s1334_s29 = smov 24  }
  0x12   :  { %36 = dma.hbm_to_vmem [thread:$0]  %s1577_s1, 6144, %s31_s19, [#allocation6], %s1333_s28, %s1333_s28, %s1334_s29  }
  0x13   :  { %s1335_s7 = smov [#allocation2]   ;;  %s1260_s11 = scalar_lea.hbm %s1576_s0, 256 }
  0x14   :  { %s18_s8 = sshll.u32 %s1335_s7, 4  ;;  %p1261_p8 = scmp.ne.s32.totalorder %s1576_s0, %s1260_s11  ;;  %s19_s8 = int_to_ptr.vmem [resolvable:$true] %s18_s8 }
  0x15   :  { %p1264_p9 = scmp.lt.u32.totalorder %s1260_s11, %s1576_s0 }
  0x17   :  { %p1266_p10 = pnand %p1264_p9, %p1261_p8 }
  0x19   :  { %1269 = shalt.err (!%p1266_p10)
}
  0x1a   :  { %s1270_s16 = scalar_lea.vmem %s19_s8, 256  ;;  %p1275_p12 = scmp.lt.s32.totalorder %s19_s8, %s19_s8 }
  0x1b   :  { %p1271_p11 = scmp.ne.s32.totalorder %s19_s8, %s1270_s16  ;;  %p1276_p13 = scmp.lt.s32.totalorder %s1270_s16, %s1270_s16 }
  0x1d   :  { %p1277_p0 = por %p1276_p13, %p1275_p12 }
  0x1f   :  { %p1278_p1 = pnand %p1277_p0, %p1271_p11 }
  0x21   :  { %1281 = shalt.err (!%p1278_p1)
}
  0x22   :  { %s1336_s1 = smov 128   ;;  %s1337_s17 = smov 8  }
  0x23   :  { %24 = dma.hbm_to_vmem [thread:$0]  %s1576_s0, 256, %s19_s8, [#allocation3], %s1336_s1, %s1336_s1, %s1337_s17  }
  0x24   :  { %s1338_s20 = smov [#allocation7]   ;;  %s1282_s24 = scalar_lea.hbm %s1579_s3, 3072 }
  0x25   :  { %s44_s21 = sshll.u32 %s1338_s20, 4  ;;  %p1283_p2 = scmp.ne.s32.totalorder %s1579_s3, %s1282_s24  ;;  %s45_s21 = int_to_ptr.vmem [resolvable:$true] %s44_s21 }
  0x26   :  { %p1286_p3 = scmp.lt.u32.totalorder %s1282_s24, %s1579_s3 }
  0x28   :  { %p1288_p4 = pnand %p1286_p3, %p1283_p2 }
  0x2a   :  { %1291 = shalt.err (!%p1288_p4)
}
  0x2b   :  { %s1292_s29 = scalar_lea.vmem %s45_s21, 3072  ;;  %p1297_p6 = scmp.lt.s32.totalorder %s45_s21, %s45_s21 }
  0x2c   :  { %p1293_p5 = scmp.ne.s32.totalorder %s45_s21, %s1292_s29  ;;  %p1298_p7 = scmp.lt.s32.totalorder %s1292_s29, %s1292_s29 }
  0x2e   :  { %p1299_p8 = por %p1298_p7, %p1297_p6 }
  0x30   :  { %p1300_p9 = pnand %p1299_p8, %p1293_p5 }
  0x32   :  { %1303 = shalt.err (!%p1300_p9)
}
  0x33   :  { %s1339_s0 = smov 64   ;;  %s1340_s30 = smov 4  }
  0x34   :  { %50 = dma.hbm_to_vmem [thread:$0]  %s1579_s3, 3072, %s45_s21, [#allocation6], %s1339_s0, %s1339_s0, %s1340_s30  }
  0x35   :  { %1326 = dma.done.wait [#allocation3], 256  }
  0x36   :  { %1327 = vsyncadd [#allocation3], 4294967040 }
  0x37   :  { %1328 = dma.done.wait [#allocation6], 9216  }
  0x38   :  { %1329 = vsyncadd [#allocation6], 4294958080  ;;  %v1341_v0 = vmov 0   ;;  %v1118_v1 = vld [vmem:[#allocation5 + $0x4] ss:$24 sps:$4 sm:$0xff]   ;;  %v63_v33 = vld [vmem:[#allocation2] sm:$0xff] }
  0x39   :  { %418 = vmatprep.mubr.bf16.mxu0 %v1341_v0  ;;  %461 = vmatprep.mubr.bf16.mxu1 %v1341_v0  ;;  %v1120_v2 = vld [vmem:[#allocation5 + $0xc] ss:$24 sps:$4 sm:$0xff]   ;;  %v1122_v3 = vld [vmem:[#allocation5] ss:$24 sps:$4 sm:$0xff]   ;;  %v1126_v6 = vld [vmem:[#allocation5 + $0x3c] ss:$24 sps:$4 sm:$0xff]  }
  0x3a   :  { %386 = vmatprep.subr.bf16.mxu0 %v1118_v1  ;;  %v1123_v4 = vld [vmem:[#allocation5 + $0x8] ss:$24 sps:$4 sm:$0xff]   ;;  %429 = vmatprep.subr.bf16.mxu1 %v1120_v2  ;;  %v1124_v5 = vld [vmem:[#allocation5 + $0x34] ss:$24 sps:$4 sm:$0xff]   ;;  %v1129_v8 = vld [vmem:[#allocation5 + $0x38] ss:$24 sps:$4 sm:$0xff]  }
  0x3b   :  { %387 = vmatpush1.bf16.msra.mxu0 %v1122_v3  ;;  %430 = vmatpush1.bf16.msra.mxu1 %v1123_v4  ;;  %v1128_v7 = vld [vmem:[#allocation5 + $0x30] ss:$24 sps:$4 sm:$0xff]   ;;  %v1130_v9 = vld [vmem:[#allocation5 + $0x64] ss:$24 sps:$4 sm:$0xff]   ;;  %v1134_v11 = vld [vmem:[#allocation5 + $0x60] ss:$24 sps:$4 sm:$0xff]  }
  0x3c   :  { %388 = vmatprep.subr.bf16.mxu0 %v1124_v5  ;;  %431 = vmatprep.subr.bf16.mxu1 %v1126_v6  ;;  %v1132_v10 = vld [vmem:[#allocation5 + $0x6c] ss:$24 sps:$4 sm:$0xff]   ;;  %v1135_v12 = vld [vmem:[#allocation5 + $0x68] ss:$24 sps:$4 sm:$0xff]   ;;  %v1138_v14 = vld [vmem:[#allocation5 + $0x9c] ss:$24 sps:$4 sm:$0xff]  }
  0x3d   :  { %v1136_v13 = vld [vmem:[#allocation5 + $0x94] ss:$24 sps:$4 sm:$0xff]   ;;  %v1140_v15 = vld [vmem:[#allocation5 + $0x90] ss:$24 sps:$4 sm:$0xff]   ;;  %v1142_v17 = vld [vmem:[#allocation5 + $0xc4] ss:$24 sps:$4 sm:$0xff]  }
  0x3e   :  { %v1141_v16 = vld [vmem:[#allocation5 + $0x98] ss:$24 sps:$4 sm:$0xff]   ;;  %v1144_v18 = vld [vmem:[#allocation5 + $0xcc] ss:$24 sps:$4 sm:$0xff]   ;;  %v1147_v20 = vld [vmem:[#allocation5 + $0xc8] ss:$24 sps:$4 sm:$0xff]  }
  0x3f   :  { %389 = vmatpush1.bf16.msra.mxu0 %v1128_v7  ;;  %432 = vmatpush1.bf16.msra.mxu1 %v1129_v8  ;;  %v1146_v19 = vld [vmem:[#allocation5 + $0xc0] ss:$24 sps:$4 sm:$0xff]   ;;  %v1148_v21 = vld [vmem:[#allocation5 + $0xf4] ss:$24 sps:$4 sm:$0xff]   ;;  %v1152_v23 = vld [vmem:[#allocation5 + $0xf0] ss:$24 sps:$4 sm:$0xff]  }
  0x40   :  { %390 = vmatprep.subr.bf16.mxu0 %v1130_v9  ;;  %433 = vmatprep.subr.bf16.mxu1 %v1132_v10  ;;  %v1150_v22 = vld [vmem:[#allocation5 + $0xfc] ss:$24 sps:$4 sm:$0xff]   ;;  %v1153_v24 = vld [vmem:[#allocation5 + $0xf8] ss:$24 sps:$4 sm:$0xff]   ;;  %v1156_v26 = vld [vmem:[#allocation5 + $0x12c] ss:$24 sps:$4 sm:$0xff]  }
  0x41   :  { %v1154_v25 = vld [vmem:[#allocation5 + $0x124] ss:$24 sps:$4 sm:$0xff]   ;;  %v1158_v27 = vld [vmem:[#allocation5 + $0x120] ss:$24 sps:$4 sm:$0xff]   ;;  %v1160_v29 = vld [vmem:[#allocation5 + $0x154] ss:$24 sps:$4 sm:$0xff]  }
  0x42   :  { %v1159_v28 = vld [vmem:[#allocation5 + $0x128] ss:$24 sps:$4 sm:$0xff]   ;;  %v1162_v30 = vld [vmem:[#allocation5 + $0x15c] ss:$24 sps:$4 sm:$0xff]   ;;  %v1165_v32 = vld [vmem:[#allocation5 + $0x158] ss:$24 sps:$4 sm:$0xff]  }
  0x43   :  { %391 = vmatpush1.bf16.msra.mxu0 %v1134_v11  ;;  %434 = vmatpush1.bf16.msra.mxu1 %v1135_v12  ;;  %v1164_v31 = vld [vmem:[#allocation5 + $0x150] ss:$24 sps:$4 sm:$0xff]   ;;  %v64_v34 = vld [vmem:[#allocation2 + $0x8] sm:$0xff]  ;;  %v1168_v35 = vld [vmem:[#allocation5 + $0x14] ss:$24 sps:$4 sm:$0xff]   ;;  %v1342_v53 = vmov 0.0  }
  0x44   :  { %392 = vmatprep.subr.bf16.mxu0 %v1136_v13  ;;  %435 = vmatprep.subr.bf16.mxu1 %v1138_v14  ;;  %v65_v36 = vpack.c.bf16 %v64_v34, %v63_v33  ;;  %v1166_v37 = vld [vmem:[#allocation5 + $0x10] ss:$24 sps:$4 sm:$0xff]   ;;  %v1171_v38 = vld [vmem:[#allocation5 + $0x44] ss:$24 sps:$4 sm:$0xff]   ;;  %v1169_v39 = vld [vmem:[#allocation5 + $0x40] ss:$24 sps:$4 sm:$0xff]   ;;  %v116_v13 = vlaneseq }
  0x45   :  { %v1174_v40 = vld [vmem:[#allocation5 + $0x74] ss:$24 sps:$4 sm:$0xff]   ;;  %v1172_v41 = vld [vmem:[#allocation5 + $0x70] ss:$24 sps:$4 sm:$0xff]   ;;  %v1177_v42 = vld [vmem:[#allocation5 + $0xa4] ss:$24 sps:$4 sm:$0xff]  }
  0x46   :  { %v1175_v43 = vld [vmem:[#allocation5 + $0xa0] ss:$24 sps:$4 sm:$0xff]   ;;  %v1180_v44 = vld [vmem:[#allocation5 + $0xd4] ss:$24 sps:$4 sm:$0xff]   ;;  %v1178_v45 = vld [vmem:[#allocation5 + $0xd0] ss:$24 sps:$4 sm:$0xff]  }
  0x47   :  { %393 = vmatpush1.bf16.msra.mxu0 %v1140_v15  ;;  %436 = vmatpush1.bf16.msra.mxu1 %v1141_v16  ;;  %v1183_v46 = vld [vmem:[#allocation5 + $0x104] ss:$24 sps:$4 sm:$0xff]   ;;  %v1181_v47 = vld [vmem:[#allocation5 + $0x100] ss:$24 sps:$4 sm:$0xff]   ;;  %v1186_v48 = vld [vmem:[#allocation5 + $0x134] ss:$24 sps:$4 sm:$0xff]  }
  0x48   :  { %394 = vmatprep.subr.bf16.mxu0 %v1142_v17  ;;  %437 = vmatprep.subr.bf16.mxu1 %v1144_v18  ;;  %v1184_v49 = vld [vmem:[#allocation5 + $0x130] ss:$24 sps:$4 sm:$0xff]   ;;  %v1189_v50 = vld [vmem:[#allocation5 + $0x164] ss:$24 sps:$4 sm:$0xff]   ;;  %v1187_v51 = vld [vmem:[#allocation5 + $0x160] ss:$24 sps:$4 sm:$0xff]  }
  0x49   :  { %v1190_v52 = vld [vmem:[#allocation7 + $0x80] sm:$0xff]   ;;  %v1193_v56 = vld [vmem:[#allocation7 + $0x88] sm:$0xff]   ;;  %v1196_v59 = vld [vmem:[#allocation7 + $0x90] sm:$0xff]   ;;  %vm1343_vm0 = vmmov 0   ;;  %v1417_v14 = vshrl.u32 %v116_v13, 7  ;;  %s1344_s10 = smov [#allocation8]  }
  0x4a   :  { %v1191_v54 = vld [vmem:[#allocation7 + $0x40] sm:$0xff]   ;;  %v1194_v57 = vld [vmem:[#allocation7 + $0x48] sm:$0xff]   ;;  %v1197_v60 = vld [vmem:[#allocation7 + $0x50] sm:$0xff]   ;;  %s968_s11 = sshll.u32 %s1344_s10, 4  ;;  %s969_s11 = int_to_ptr.vmem [resolvable:$true] %s968_s11 }
  0x4b   :  { %395 = vmatpush1.bf16.msra.mxu0 %v1146_v19  ;;  %438 = vmatpush1.bf16.msra.mxu1 %v1147_v20  ;;  %v1192_v55 = vld [vmem:[#allocation7] sm:$0xff]   ;;  %v1195_v58 = vld [vmem:[#allocation7 + $0x8] sm:$0xff]   ;;  %v1198_v61 = vld [vmem:[#allocation7 + $0x10] sm:$0xff]   ;;  %v118_v15 = vsub.s32 0, %v1417_v14  ;;  %v126_v16 = vsub.s32 2, %v1417_v14  ;;  %v122_v18 = vsub.s32 1, %v1417_v14  ;;  %p1309_p11 = scmp.lt.s32.totalorder %s969_s11, %s969_s11 }
  0x4c   :  { %396 = vmatprep.subr.bf16.mxu0 %v1148_v21  ;;  %439 = vmatprep.subr.bf16.mxu1 %v1150_v22  ;;  %v1199_v62 = vld [vmem:[#allocation7 + $0x98] sm:$0xff]   ;;  %v1202_v1 = vld [vmem:[#allocation7 + $0xa0] sm:$0xff]   ;;  %v1205_v4 = vld [vmem:[#allocation7 + $0xa8] sm:$0xff]   ;;  %s1304_s12 = scalar_lea.vmem %s969_s11, 256 }
  0x4d   :  { %v1200_v63 = vld [vmem:[#allocation7 + $0x58] sm:$0xff]   ;;  %v1203_v2 = vld [vmem:[#allocation7 + $0x60] sm:$0xff]   ;;  %v1206_v5 = vld [vmem:[#allocation7 + $0x68] sm:$0xff]   ;;  %p1305_p10 = scmp.ne.s32.totalorder %s969_s11, %s1304_s12  ;;  %p1310_p12 = scmp.lt.s32.totalorder %s1304_s12, %s1304_s12 }
  0x4e   :  { %v1204_v3 = vld [vmem:[#allocation7 + $0x20] sm:$0xff]   ;;  %v1207_v6 = vld [vmem:[#allocation7 + $0x28] sm:$0xff]   ;;  %v1208_v7 = vld [vmem:[#allocation7 + $0xb0] sm:$0xff]  }
  0x4f   :  { %397 = vmatpush1.bf16.msra.mxu0 %v1152_v23  ;;  %440 = vmatpush1.bf16.msra.mxu1 %v1153_v24  ;;  %v1209_v8 = vld [vmem:[#allocation7 + $0x70] sm:$0xff]   ;;  %v1211_v10 = vld [vmem:[#allocation7 + $0xb8] sm:$0xff]   ;;  %p1311_p13 = por %p1310_p12, %p1309_p11 }
  0x50   :  { %398 = vmatprep.subr.bf16.mxu0 %v1154_v25  ;;  %441 = vmatprep.subr.bf16.mxu1 %v1156_v26  ;;  %v1210_v9 = vld [vmem:[#allocation7 + $0x30] sm:$0xff]   ;;  %v1212_v11 = vld [vmem:[#allocation7 + $0x78] sm:$0xff]  }
  0x51   :  { %v1213_v12 = vld [vmem:[#allocation7 + $0x38] sm:$0xff]   ;;  %v1424_v17 = vld [vmem:[%s1578_s2] sm:$0x3f]  ;;  %p1312_p0 = pnand %p1311_p13, %p1305_p10 }
  0x52   :  { %v119_v19 = vrot.slane %v1424_v17, %v118_v15  ;;  %v127_v20 = vrot.slane %v1424_v17, %v126_v16  ;;  %v123_v21 = vrot.slane %v1424_v17, %v122_v18 }
  0x53   :  { %399 = vmatpush1.bf16.msra.mxu0 %v1158_v27  ;;  %442 = vmatpush1.bf16.msra.mxu1 %v1159_v28 }
  0x54   :  { %400 = vmatprep.subr.bf16.mxu0 %v1160_v29  ;;  %443 = vmatprep.subr.bf16.mxu1 %v1162_v30 }
  0x57   :  { %401 = vmatpush1.bf16.msra.mxu0 %v1164_v31  ;;  %444 = vmatpush1.bf16.msra.mxu1 %v1165_v32 }
  0x58   :  { %472 = vmatprep.subr.bf16.mxu0 %v1168_v35  ;;  %1054 = vmatprep.subr.bf16.mxu1 %v1191_v54 }
  0x5a   :  { %419 = vmatmul.mubr.bf16.vlgmr.msra.gmra.mrb[0].mxu0 %v65_v36  ;;  %462 = vmatmul.mubr.bf16.vlgmr.msra.gmra.mrb[0].mxu1 %v65_v36 }
  0x5b   :  { %473 = vmatpush1.bf16.msra.mxu0 %v1166_v37  ;;  %504 = vmatprep.mubr.bf16.mxu0 %v1341_v0  ;;  %v1201_v0 = vld [vmem:[#allocation7 + $0x18] sm:$0xff]  }
  0x5c   :  { %474 = vmatprep.subr.bf16.mxu0 %v1171_v38  ;;  %1055 = vmatpush3.bf16.msra.mxu1 %v1192_v55 }
  0x5d   :  { %1056 = vmatprep.subr.bf16.mxu1 %v1194_v57 }
  0x5f   :  { %475 = vmatpush1.bf16.msra.mxu0 %v1169_v39 }
  0x60   :  { %476 = vmatprep.subr.bf16.mxu0 %v1174_v40  ;;  %1057 = vmatpush3.bf16.msra.mxu1 %v1195_v58 }
  0x61   :  { %1058 = vmatprep.subr.bf16.mxu1 %v1197_v60 }
  0x63   :  { %477 = vmatpush1.bf16.msra.mxu0 %v1172_v41 }
  0x64   :  { %478 = vmatprep.subr.bf16.mxu0 %v1177_v42  ;;  %1059 = vmatpush3.bf16.msra.mxu1 %v1198_v61 }
  0x65   :  { %1060 = vmatprep.subr.bf16.mxu1 %v1200_v63 }
  0x67   :  { %479 = vmatpush1.bf16.msra.mxu0 %v1175_v43 }
  0x68   :  { %480 = vmatprep.subr.bf16.mxu0 %v1180_v44  ;;  %1061 = vmatpush3.bf16.msra.mxu1 %v1201_v0 }
  0x69   :  { %1062 = vmatprep.subr.bf16.mxu1 %v1203_v2 }
  0x6b   :  { %481 = vmatpush1.bf16.msra.mxu0 %v1178_v45 }
  0x6c   :  { %482 = vmatprep.subr.bf16.mxu0 %v1183_v46  ;;  %1063 = vmatpush3.bf16.msra.mxu1 %v1204_v3 }
  0x6d   :  { %1064 = vmatprep.subr.bf16.mxu1 %v1206_v5 }
  0x6f   :  { %483 = vmatpush1.bf16.msra.mxu0 %v1181_v47 }
  0x70   :  { %484 = vmatprep.subr.bf16.mxu0 %v1186_v48  ;;  %1065 = vmatpush3.bf16.msra.mxu1 %v1207_v6 }
  0x71   :  { %1066 = vmatprep.subr.bf16.mxu1 %v1209_v8 }
  0x73   :  { %485 = vmatpush1.bf16.msra.mxu0 %v1184_v49 }
  0x74   :  { %486 = vmatprep.subr.bf16.mxu0 %v1189_v50  ;;  %1067 = vmatpush3.bf16.msra.mxu1 %v1210_v9 }
  0x75   :  { %1068 = vmatprep.subr.bf16.mxu1 %v1212_v11 }
  0x77   :  { %487 = vmatpush1.bf16.msra.mxu0 %v1187_v51 }
  0x78   :  { %1085 = vmatprep.subr.bf16.mxu0 %v1342_v53  ;;  %1069 = vmatpush3.bf16.msra.mxu1 %v1213_v12  ;;  %v130_v12 = vsub.s32 3, %v1417_v14 }
  0x7a   :  { %505 = vmatmul.mubr.bf16.vlgmr.msra.gmra.mrb[4].mxu0 %v65_v36 }
  0x7b   :  { %1086 = vmatpush3.bf16.msra.mxu0 %v1190_v52  ;;  %1101 = vmatprep.mubr.msk.bf16.mxu0 %vm1343_vm0, %v1342_v53 }
  0x7c   :  { %1087 = vmatprep.subr.bf16.mxu0 %v1342_v53 }
  0x7f   :  { %1088 = vmatpush3.bf16.msra.mxu0 %v1193_v56 }
  0x80   :  { %1089 = vmatprep.subr.bf16.mxu0 %v1342_v53 }
  0x83   :  { %1090 = vmatpush3.bf16.msra.mxu0 %v1196_v59 }
  0x84   :  { %1091 = vmatprep.subr.bf16.mxu0 %v1342_v53 }
  0x87   :  { %1092 = vmatpush3.bf16.msra.mxu0 %v1199_v62 }
  0x88   :  { %1093 = vmatprep.subr.bf16.mxu0 %v1342_v53 }
  0x8b   :  { %1094 = vmatpush3.bf16.msra.mxu0 %v1202_v1 }
  0x8c   :  { %1095 = vmatprep.subr.bf16.mxu0 %v1342_v53 }
  0x8f   :  { %1096 = vmatpush3.bf16.msra.mxu0 %v1205_v4 }
  0x90   :  { %1097 = vmatprep.subr.bf16.mxu0 %v1342_v53 }
  0x93   :  { %1098 = vmatpush3.bf16.msra.mxu0 %v1208_v7 }
  0x94   :  { %1099 = vmatprep.subr.bf16.mxu0 %v1342_v53 }
  0x97   :  { %1100 = vmatpush3.bf16.msra.mxu0 %v1211_v10 }
 0x12d   :  { %v420_v22 = vpop.f32.mrb[0].mxu0  ;;  %v463_v23 = vpop.f32.mrb[0].mxu1 }
 0x12e   :  { %v1430_v24 = vadd.f32 %v420_v22, %v119_v19  ;;  %v1432_v25 = vadd.f32 %v463_v23, %v127_v20  ;;  %v422_v26 = vpop.f32.mrb[1].mxu0  ;;  %v1434_v27 = vpop.f32.mrb[1].mxu1 }
 0x12f   :  { %v1436_v28 = vadd.f32 %v422_v26, %v123_v21  ;;  %v424_v29 = vpop.f32.mrb[2].mxu0  ;;  %v467_v30 = vpop.f32.mrb[2].mxu1 }
 0x130   :  { %v1439_v31 = vmul.f32 0.70710677, %v1430_v24  ;;  %v1442_v32 = vmul.f32 0.70710677, %v1432_v25  ;;  %v1447_v34 = vadd.f32 %v424_v29, %v119_v19  ;;  %v426_v35 = vpop.f32.mrb[3].mxu0  ;;  %v1449_v36 = vpop.f32.mrb[3].mxu1  ;;  %v1458_v47 = vadd.f32 %v467_v30, %v127_v20 }
 0x131   :  { %v1445_v33 = vmul.f32 0.70710677, %v1436_v28  ;;  %v1463_v52 = vadd.f32 %v426_v35, %v123_v21  ;;  %v138_v20 = vsub.s32 5, %v1417_v14  ;;  %v134_v30 = vsub.s32 4, %v1417_v14 }
 0x132   :  { %v527_v37 = vand.u32 2147483647, %v1439_v31  ;;  %v529_v38 = vand.u32 2147483647, %v1442_v32  ;;  %v1455_v40 = vmul.f32 0.70710677, %v1447_v34 }
 0x133   :  { %v528_v39 = vand.u32 2147483647, %v1445_v33  ;;  %v1461_v51 = vmul.f32 0.70710677, %v1458_v47  ;;  %v1467_v55 = vmul.f32 0.70710677, %v1463_v52 }
 0x134   :  { %v533_v41 = vmul.f32 0.3275911, %v527_v37  ;;  %v535_v42 = vmul.f32 0.3275911, %v529_v38  ;;  %v530_v44 = vand.u32 2147483647, %v1455_v40 }
 0x135   :  { %v534_v43 = vmul.f32 0.3275911, %v528_v39  ;;  %v532_v53 = vand.u32 2147483647, %v1461_v51  ;;  %v605_v54 = vsub.f32 0.0, %v527_v37  ;;  %v607_v56 = vsub.f32 0.0, %v529_v38 }
 0x136   :  { %v539_v45 = vadd.f32 1.0, %v533_v41  ;;  %v541_v46 = vadd.f32 1.0, %v535_v42  ;;  %v536_v48 = vmul.f32 0.3275911, %v530_v44  ;;  %v531_v58 = vand.u32 2147483647, %v1467_v55 }
 0x137   :  { %v540_v49 = vadd.f32 1.0, %v534_v43  ;;  %v538_v57 = vmul.f32 0.3275911, %v532_v53  ;;  %v611_v60 = vmul.f32 %v605_v54, %v527_v37  ;;  %v613_v63 = vmul.f32 %v607_v56, %v529_v38 }
 0x138   :  { %1214 = vrcp.f32 %v539_v45  ;;  %v542_v50 = vadd.f32 1.0, %v536_v48  ;;  %v537_v61 = vmul.f32 0.3275911, %v531_v58  ;;  %v606_v0 = vsub.f32 0.0, %v528_v39 }
 0x139   :  { %1216 = vrcp.f32 %v541_v46  ;;  %v544_v59 = vadd.f32 1.0, %v538_v57  ;;  %v608_v4 = vsub.f32 0.0, %v530_v44  ;;  %v617_v6 = vmul.f32 1.442695, %v611_v60 }
 0x13a   :  { %1218 = vrcp.f32 %v540_v49  ;;  %v543_v3 = vadd.f32 1.0, %v537_v61  ;;  %v621_v9 = vmul.f32 1.442695, %v613_v63  ;;  %v612_v10 = vmul.f32 %v606_v0, %v528_v39 }
 0x13b   :  { %1220 = vrcp.f32 %v542_v50  ;;  %v614_v18 = vmul.f32 %v608_v4, %v530_v44  ;;  %v610_v19 = vsub.f32 0.0, %v532_v53  ;;  %v609_v38 = vsub.f32 0.0, %v531_v58 }
 0x13c   :  { %1222 = vrcp.f32 %v544_v59  ;;  %v619_v29 = vmul.f32 1.442695, %v612_v10  ;;  %v1492_v43 = vrot.slane %v1424_v17, %v130_v12  ;;  %v1495_v45 = vrot.slane %v1424_v17, %v138_v20 }
 0x13d   :  { %1224 = vrcp.f32 %v543_v3  ;;  %v623_v44 = vmul.f32 1.442695, %v614_v18  ;;  %v616_v14 = vmul.f32 %v610_v19, %v532_v53  ;;  %v1502_v56 = vrot.slane %v1424_v17, %v134_v30 }
 0x13e   :  { %1226 = vpow2.f32 %v617_v6  ;;  %v615_v0 = vmul.f32 %v609_v38, %v531_v58  ;;  %v466_v58 = vadd.f32 %v1434_v27, %v1492_v43  ;;  %vm641_vm1 = vcmp.ge.f32.partialorder %v1439_v31, 0.0 }
 0x13f   :  { %1228 = vpow2.f32 %v621_v9  ;;  %v627_v9 = vmul.f32 1.442695, %v616_v14  ;;  %v516_v14 = vmul.f32 0.5, %v1436_v28  ;;  %vm643_vm2 = vcmp.ge.f32.partialorder %v1442_v32, 0.0 }
 0x140   :  { %1230 = vpow2.f32 %v619_v29  ;;  %v625_v20 = vmul.f32 1.442695, %v615_v0  ;;  %vm642_vm3 = vcmp.ge.f32.partialorder %v1445_v33, 0.0  ;;  %vm644_vm4 = vcmp.ge.f32.partialorder %v1455_v40, 0.0 }
 0x141   :  { %1232 = vpow2.f32 %v623_v44  ;;  %v518_v40 = vmul.f32 0.5, %v1447_v34  ;;  %vm646_vm5 = vcmp.ge.f32.partialorder %v1461_v51, 0.0  ;;  %v520_v34 = vmul.f32 0.5, %v1458_v47 }
 0x142   :  { %v1470_v62 = vpop.eup %1214  ;;  %1234 = vpow2.f32 %v627_v9  ;;  %vm645_vm6 = vcmp.ge.f32.partialorder %v1467_v55, 0.0 }
 0x143   :  { %v1472_v1 = vpop.eup %1216  ;;  %v551_v2 = vmul.f32 1.0614054, %v1470_v62  ;;  %1236 = vpow2.f32 %v625_v20 }
 0x144   :  { %v553_v5 = vmul.f32 1.0614054, %v1472_v1  ;;  %v1476_v8 = vpop.eup %1218 }
 0x145   :  { %v557_v7 = vadd.f32 -1.4531521, %v551_v2  ;;  %v552_v15 = vmul.f32 1.0614054, %v1476_v8  ;;  %v1481_v16 = vpop.eup %1220 }
 0x146   :  { %v559_v11 = vadd.f32 -1.4531521, %v553_v5  ;;  %v554_v23 = vmul.f32 1.0614054, %v1481_v16  ;;  %v1489_v42 = vpop.eup %1222 }
 0x147   :  { %v563_v13 = vmul.f32 %v1470_v62, %v557_v7  ;;  %v558_v26 = vadd.f32 -1.4531521, %v552_v15  ;;  %v556_v60 = vmul.f32 1.0614054, %v1489_v42  ;;  %v1507_v61 = vpop.eup %1224 }
 0x148   :  { %v565_v21 = vmul.f32 %v1472_v1, %v559_v11  ;;  %v560_v39 = vadd.f32 -1.4531521, %v554_v23  ;;  %v555_v17 = vmul.f32 1.0614054, %v1507_v61  ;;  %v1227_v18 = vpop.eup %1226 }
 0x149   :  { %v569_v22 = vadd.f32 1.4214138, %v563_v13  ;;  %v564_v41 = vmul.f32 %v1476_v8, %v558_v26  ;;  %v562_v6 = vadd.f32 -1.4531521, %v556_v60  ;;  %v1229_v23 = vpop.eup %1228  ;;  %v515_v26 = vmul.f32 0.5, %v1430_v24 }
 0x14a   :  { %v571_v35 = vadd.f32 1.4214138, %v565_v21  ;;  %v566_v49 = vmul.f32 %v1481_v16, %v560_v39  ;;  %v561_v13 = vadd.f32 -1.4531521, %v555_v17  ;;  %v517_v39 = vmul.f32 0.5, %v1432_v25 }
 0x14b   :  { %v575_v37 = vmul.f32 %v1470_v62, %v569_v22  ;;  %v570_v54 = vadd.f32 1.4214138, %v564_v41  ;;  %v568_v15 = vmul.f32 %v1489_v42, %v562_v6 }
 0x14c   :  { %v577_v46 = vmul.f32 %v1472_v1, %v571_v35  ;;  %v572_v53 = vadd.f32 1.4214138, %v566_v49  ;;  %v567_v30 = vmul.f32 %v1507_v61, %v561_v13 }
 0x14d   :  { %v581_v48 = vadd.f32 -0.28449672, %v575_v37  ;;  %v1499_v50 = vpop.f32.mrb[4].mxu0  ;;  %v576_v2 = vmul.f32 %v1476_v8, %v570_v54  ;;  %v574_v35 = vadd.f32 1.4214138, %v568_v15 }
 0x14e   :  { %v1504_v57 = vpop.f32.mrb[5].mxu0  ;;  %v583_v59 = vadd.f32 -0.28449672, %v577_v46  ;;  %v578_v10 = vmul.f32 %v1481_v16, %v572_v53  ;;  %v573_v41 = vadd.f32 1.4214138, %v567_v30  ;;  %v507_v20 = vadd.f32 %v1499_v50, %v1502_v56 }
 0x14f   :  { %v587_v63 = vmul.f32 %v1470_v62, %v581_v48  ;;  %v1511_v3 = vpop.f32.mrb[6].mxu0  ;;  %v582_v11 = vadd.f32 -0.28449672, %v576_v2  ;;  %v580_v44 = vmul.f32 %v1489_v42, %v574_v35  ;;  %v470_v50 = vadd.f32 %v1449_v36, %v1492_v43 }
 0x150   :  { %v589_v4 = vmul.f32 %v1472_v1, %v583_v59  ;;  %v1515_v5 = vpop.f32.mrb[7].mxu0  ;;  %v584_v21 = vadd.f32 -0.28449672, %v578_v10  ;;  %v579_v54 = vmul.f32 %v1507_v61, %v573_v41  ;;  %v519_v36 = vmul.f32 0.5, %v1463_v52  ;;  %v1029_v52 = vld [vmem:[%s1580_s4] ss:$0 sm:$0xff] }
 0x151   :  { %v593_v7 = vadd.f32 0.2548296, %v587_v63  ;;  %v588_v22 = vmul.f32 %v1476_v8, %v582_v11  ;;  %v586_v59 = vadd.f32 -0.28449672, %v580_v44  ;;  %v509_v11 = vadd.f32 %v1504_v57, %v1495_v45 }
 0x152   :  { %v595_v12 = vadd.f32 0.2548296, %v589_v4  ;;  %v590_v37 = vmul.f32 %v1481_v16, %v584_v21  ;;  %v585_v2 = vadd.f32 -0.28449672, %v579_v54  ;;  %v511_v51 = vadd.f32 %v1511_v3, %v1502_v56 }
 0x153   :  { %v599_v19 = vmul.f32 %v1470_v62, %v593_v7  ;;  %v594_v38 = vadd.f32 0.2548296, %v588_v22 }
 0x154   :  { %v601_v29 = vmul.f32 %v1472_v1, %v595_v12  ;;  %v596_v48 = vadd.f32 0.2548296, %v590_v37  ;;  %v1231_v1 = vpop.eup %1230  ;;  %v591_v31 = vmul.f32 %v1507_v61, %v585_v2 }
 0x155   :  { %v629_v27 = vmul.f32 %v1227_v18, %v599_v19  ;;  %v600_v24 = vmul.f32 %v1476_v8, %v594_v38  ;;  %v1233_v0 = vpop.eup %1232  ;;  %v592_v8 = vmul.f32 %v1489_v42, %v586_v59 }
 0x156   :  { %v631_v62 = vmul.f32 %v1229_v23, %v601_v29  ;;  %v602_v25 = vmul.f32 %v1481_v16, %v596_v48  ;;  %v597_v13 = vadd.f32 0.2548296, %v591_v31  ;;  %v1235_v18 = vpop.eup %1234  ;;  %v513_v48 = vadd.f32 %v1515_v5, %v1495_v45 }
 0x157   :  { %v635_v46 = vsub.f32 1.0, %v629_v27  ;;  %v630_v63 = vmul.f32 %v1231_v1, %v600_v24  ;;  %v598_v9 = vadd.f32 0.2548296, %v592_v8 }
 0x158   :  { %v637_v49 = vsub.f32 1.0, %v631_v62  ;;  %v632_v4 = vmul.f32 %v1233_v0, %v602_v25  ;;  %v603_v57 = vmul.f32 %v1507_v61, %v597_v13 }
 0x159   :  { %v647_v60 = vsub.f32 0.0, %v635_v46  ;;  %v636_v17 = vsub.f32 1.0, %v630_v63  ;;  %v604_v15 = vmul.f32 %v1489_v42, %v598_v9 }
 0x15a   :  { %v649_v53 = vsub.f32 0.0, %v637_v49  ;;  %v638_v10 = vsub.f32 1.0, %v632_v4 }
 0x15b   :  { %v653_v28 = vsel %vm641_vm1, %v635_v46, %v647_v60  ;;  %v648_v16 = vsub.f32 0.0, %v636_v17  ;;  %v634_v30 = vmul.f32 %v1235_v18, %v604_v15 }
 0x15c   :  { %v659_v6 = vadd.f32 1.0, %v653_v28  ;;  %v655_v7 = vsel %vm643_vm2, %v637_v49, %v649_v53  ;;  %v650_v19 = vsub.f32 0.0, %v638_v10 }
 0x15d   :  { %v661_v32 = vadd.f32 1.0, %v655_v7  ;;  %v654_v21 = vsel %vm642_vm3, %v636_v17, %v648_v16  ;;  %v640_v62 = vsub.f32 1.0, %v634_v30 }
 0x15e   :  { %v665_v12 = vmul.f32 %v659_v6, %v515_v26  ;;  %v660_v29 = vadd.f32 1.0, %v654_v21  ;;  %v1237_v26 = vpop.eup %1236  ;;  %v656_v35 = vsel %vm644_vm4, %v638_v10, %v650_v19 }
 0x15f   :  { %v667_v22 = vmul.f32 %v661_v32, %v517_v39  ;;  %v662_v42 = vadd.f32 1.0, %v656_v35  ;;  %v633_v38 = vmul.f32 %v1237_v26, %v603_v57 }
 0x160   :  { %v671_v23 = vmul.f32 %v665_v12, %v466_v58  ;;  %v666_v37 = vmul.f32 %v660_v29, %v516_v14  ;;  %v652_v58 = vsub.f32 0.0, %v640_v62 }
 0x161   :  { %v673_v27 = vmul.f32 %v667_v22, %v509_v11  ;;  %v668_v33 = vmul.f32 %v662_v42, %v518_v40  ;;  %v639_v39 = vsub.f32 1.0, %v633_v38 }
 0x162   :  { %v672_v41 = vmul.f32 %v666_v37, %v507_v20  ;;  %v658_v46 = vsel %vm646_vm5, %v640_v62, %v652_v58 }
 0x163   :  { %v674_v61 = vmul.f32 %v668_v33, %v470_v50  ;;  %v651_v44 = vsub.f32 0.0, %v639_v39  ;;  %v664_v24 = vadd.f32 1.0, %v658_v46 }
 0x165   :  { %v677_v1 = vpack.c.bf16 %v674_v61, %v671_v23  ;;  %v657_v14 = vsel %vm645_vm6, %v639_v39, %v651_v44  ;;  %v670_v49 = vmul.f32 %v664_v24, %v520_v34 }
 0x166   :  { %v663_v43 = vadd.f32 1.0, %v657_v14 }
 0x167   :  { %v676_v59 = vmul.f32 %v670_v49, %v513_v48 }
 0x168   :  { %v669_v54 = vmul.f32 %v663_v43, %v519_v36 }
 0x169   :  { %v679_v25 = vpack.c.bf16 %v676_v59, %v673_v27 }
 0x16a   :  { %v675_v60 = vmul.f32 %v669_v54, %v511_v51 }
 0x16b   :  { %1102 = vmatmul.mubr.bf16.vlgmr.msra.gmra.mrb[8].mxu0 %v679_v25 }
 0x16c   :  { %v678_v47 = vpack.c.bf16 %v675_v60, %v672_v41 }
 0x16e   :  { %911 = vmatprep.mubr.bf16.mxu1 %v678_v47 }
 0x16f   :  { %912 = vmatmul.mubr.bf16.vlgmr.msra.gmra.mrb[4].mxu1 %v677_v1 }
 0x23e   :  { %v954_v55 = vpop.f32.mrb[8].mxu0 }
 0x23f   :  { %v1103_v45 = vpop.f32.mrb[9].mxu0 }
 0x240   :  { %v957_v5 = vpop.f32.mrb[10].mxu0 }
 0x241   :  { %v1104_v0 = vpop.f32.mrb[11].mxu0 }
 0x242   :  { %v1070_v63 = vpop.f32.mrb[4].mxu1 }
 0x243   :  { %v1071_v53 = vpop.f32.mrb[5].mxu1 }
 0x244   :  { %v1072_v2 = vadd.f32 %v1071_v53, %v1070_v63  ;;  %v1073_v56 = vpop.f32.mrb[6].mxu1 }
 0x245   :  { %v1074_v3 = vpop.f32.mrb[7].mxu1 }
 0x246   :  { %v914_v8 = vadd.f32 %v1072_v2, %v1029_v52  ;;  %v1075_v28 = vadd.f32 %v1074_v3, %v1073_v56 }
 0x248   :  { %v955_v4 = vadd.f32 %v954_v55, %v914_v8  ;;  %v917_v17 = vadd.f32 %v1075_v28, %v1029_v52 }
 0x24a   :  { %961 = vst [vmem:[#allocation8] sm:$0xff] %v955_v4  ;;  %v958_v6 = vadd.f32 %v957_v5, %v917_v17 }
 0x24c   :  { %962 = vst [vmem:[#allocation8 + $0x8] sm:$0xff] %v958_v6 }
 0x24d   :  { %1315 = shalt.err (!%p1312_p0)
}
 0x24e   :  { %s1316_s14 = scalar_lea.hbm %s1581_s5, 256 }
 0x24f   :  { %p1317_p1 = scmp.ne.s32.totalorder %s1581_s5, %s1316_s14  ;;  %p1320_p2 = scmp.lt.u32.totalorder %s1316_s14, %s1581_s5 }
 0x251   :  { %p1322_p3 = pnand %p1320_p2, %p1317_p1 }
 0x253   :  { %1325 = shalt.err (!%p1322_p3)
}
 0x254   :  { %974 = dma.vmem_to_hbm [thread:$0]  %s969_s11, 256, %s1581_s5, [#allocation4], %s1336_s1, %s1336_s1, %s1337_s17  }
 0x255   :  { %1330 = dma.done.wait [#allocation4], 256  }
 0x256   :  { %1331 = vsyncadd [#allocation4], 4294967040 }
 0x257   :  { %978 = vsyncpa [#allocation3], 1 }
 0x258   :  { %979 = vsyncpa [#allocation6], 1 }
 0x259   :  { %980 = vsyncpa [#allocation4], 1 }

</bundles_post_ra>
